<compile_context>
chip_gen: v7x
topology: tpu7x:2x2x1
jax: 0.10.0
libtpu: 0.0.40
codegen_flags: <defaults>
</compile_context>

<pallas_src>
import math

import jax
import jax.numpy as jnp
from jax.experimental import pallas as pl
from jax.experimental.pallas import tpu as pltpu


def _round_up(x, m):
    return (x + m - 1) // m * m


def _pick_tn(hidden_pad, target):
    """Largest multiple of 128 <= target that divides hidden_pad."""
    tn = min(target, hidden_pad)
    tn = max(128, tn - (tn % 128))
    while hidden_pad % tn:
        tn -= 128
    return tn


# ----------------------------------------------------------------------------
# Kernel
# ----------------------------------------------------------------------------
def _timestep_embedder_kernel(t_ref, freqs_ref, w1c_ref, w1s_ref, b1_ref,
                              w2_ref, b2_ref, out_ref, h_sc):
    # Column step 0 of each batch tile: build sinusoidal embedding, first
    # Linear (split over cos/sin halves -> no lane concat), SiLU, cache bf16
    # activations in VMEM scratch for reuse by every column tile.
    @pl.when(pl.program_id(1) == 0)
    def _():
        t = t_ref[...]                                  # (tm, 1)   f32
        args = t * freqs_ref[...]                       # (tm, half) f32
        cos_e = jnp.cos(args).astype(jnp.bfloat16)
        sin_e = jnp.sin(args).astype(jnp.bfloat16)
        h = (jnp.dot(cos_e, w1c_ref[...], preferred_element_type=jnp.float32)
             + jnp.dot(sin_e, w1s_ref[...], preferred_element_type=jnp.float32)
             + b1_ref[...])                             # (tm, Hp) f32
        # SiLU: x * sigmoid(x); reciprocal routed to the EUP (approx vrcp).
        h = h * pl.reciprocal(1.0 + jnp.exp(-h), approx=True)
        h_sc[...] = h.astype(jnp.bfloat16)

    # Second Linear, one output-column tile per grid step (streams W2).
    out = (jnp.dot(h_sc[...], w2_ref[...], preferred_element_type=jnp.float32)
           + b2_ref[...])                               # (tm, tn) f32
    out_ref[...] = out.astype(out_ref.dtype)


# ----------------------------------------------------------------------------
# One-time parameter preparation (hoisted out of the hot path).
# ----------------------------------------------------------------------------
def prepare_timestep_embedder_params(w1, b1, w2, b2,
                                     frequency_embedding_size=256,
                                     max_period=10000):
    """Pad to lane multiples of 128 and cast weights to bf16, ONCE.

    w1: (frequency_embedding_size, hidden)   (transposed torch layout)
    b1: (hidden,)    w2: (hidden, hidden)    b2: (hidden,)
    """
    hidden = w1.shape[1]
    half = frequency_embedding_size // 2
    hidden_pad = _round_up(hidden, 128)

    # Odd frequency_embedding_size: the torch reference appends a zero column
    # which multiplies w1's last input row and contributes nothing, so using
    # only the first 2*half rows of w1 is exact.
    freqs = jnp.exp(
        -math.log(max_period) * jnp.arange(half, dtype=jnp.float32) / half
    ).reshape(1, half)

    w1c = jnp.zeros((half, hidden_pad), jnp.bfloat16).at[:, :hidden].set(
        w1[:half].astype(jnp.bfloat16))
    w1s = jnp.zeros((half, hidden_pad), jnp.bfloat16).at[:, :hidden].set(
        w1[half:2 * half].astype(jnp.bfloat16))
    w2p = jnp.zeros((hidden_pad, hidden_pad), jnp.bfloat16).at[:hidden, :hidden].set(
        w2.astype(jnp.bfloat16))
    b1p = jnp.zeros((1, hidden_pad), jnp.float32).at[0, :hidden].set(
        b1.astype(jnp.float32))
    b2p = jnp.zeros((1, hidden_pad), jnp.float32).at[0, :hidden].set(
        b2.astype(jnp.float32))

    # Zero padding is exact: padded b1 columns give h=0, SiLU(0)=0, and padded
    # W2 rows/cols contribute nothing.
    return dict(freqs=freqs, w1c=w1c, w1s=w1s, b1=b1p, w2=w2p, b2=b2p,
                half=half, hidden=hidden, hidden_pad=hidden_pad)


# ----------------------------------------------------------------------------
# Per-call apply (hot path).
# ----------------------------------------------------------------------------
def timestep_embedder_apply(t, params, *, block_m=256, block_n=512,
                            out_dtype=jnp.bfloat16):
    """t: (N,) timesteps (possibly fractional). Returns (N, hidden)."""
    n = t.shape[0]
    half = params["half"]
    hidden = params["hidden"]
    hidden_pad = params["hidden_pad"]

    tm = min(block_m, _round_up(n, 16))          # bf16 sublane-pair aligned
    n_pad = _round_up(n, tm)
    tn = _pick_tn(hidden_pad, block_n)
    grid = (n_pad // tm, hidden_pad // tn)

    t2d = jnp.zeros((n_pad, 1), jnp.float32).at[:n, 0].set(t.astype(jnp.float32))

    out_itemsize = jnp.dtype(out_dtype).itemsize
    weight_bytes = 2 * (2 * half * hidden_pad + hidden_pad * hidden_pad) \
        + 4 * 2 * hidden_pad
    cost = pl.CostEstimate(
        flops=int(2 * n * hidden * (2 * half + hidden)),
        transcendentals=int(n * (2 * half + 2 * hidden)),
        bytes_accessed=int(weight_bytes + 4 * n_pad
                           + out_itemsize * n_pad * hidden_pad),
    )

    # VMEM budget: resident single-buffered W1 halves + streamed W2 tiles
    # (double-buffered) + scratch + activations, within physical capacity.
    try:
        vmem_cap = pltpu.get_tpu_info().vmem_capacity_bytes
    except Exception:  # pragma: no cover - conservative fallback
        vmem_cap = 64 * 1024 * 1024
    vmem_est = (
        2 * (2 * half * hidden_pad)              # W1 cos/sin, bf16, 1 buffer
        + 4 * (hidden_pad + half)                # b1 + freqs (f32)
        + 2 * (2 * hidden_pad * tn)              # W2 column tile, 2 buffers
        + 2 * (4 * tn)                           # b2 tile, 2 buffers
        + 2 * (4 * tm)                           # t tile, 2 buffers
        + 2 * (out_itemsize * tm * tn)           # out tile, 2 buffers
        + 2 * tm * hidden_pad                    # h scratch (bf16)
        + 4 * tm * (2 * half + 2 * hidden_pad)   # live f32 intermediates
    )
    vmem_limit = int(min(vmem_cap - 16 * 1024 * 1024,
                         max(32 * 1024 * 1024, 2 * vmem_est)))

    def _build(use_buffered):
        kw = {"pipeline_mode": pl.Buffered(1)} if use_buffered else {}

        def resident(shape):
            return pl.BlockSpec(shape, lambda i, j: (0, 0), **kw)

        return pl.pallas_call(
            _timestep_embedder_kernel,
            out_shape=jax.ShapeDtypeStruct((n_pad, hidden_pad), out_dtype),
            grid=grid,
            in_specs=[
                pl.BlockSpec((tm, 1), lambda i, j: (i, 0)),            # t tile
                resident((1, half)),                                   # freqs
                resident((half, hidden_pad)),                          # W1 cos
                resident((half, hidden_pad)),                          # W1 sin
                resident((1, hidden_pad)),                             # b1
                pl.BlockSpec((hidden_pad, tn), lambda i, j: (0, j)),   # W2 cols
                pl.BlockSpec((1, tn), lambda i, j: (0, j)),            # b2 cols
            ],
            out_specs=pl.BlockSpec((tm, tn), lambda i, j: (i, j)),
            scratch_shapes=[pltpu.VMEM((tm, hidden_pad), jnp.bfloat16)],
            compiler_params=pltpu.CompilerParams(
                # column axis carries the h scratch across steps -> arbitrary
                dimension_semantics=("parallel", "arbitrary"),
                vmem_limit_bytes=vmem_limit,
            ),
            cost_estimate=cost,
        )

    args = (t2d, params["freqs"], params["w1c"], params["w1s"],
            params["b1"], params["w2"], params["b2"])
    try:
        out = _build(True)(*args)
    except Exception:
        # Fallback for jax versions without BlockSpec(pipeline_mode=...).
        out = _build(False)(*args)

    return out[:n, :hidden]


def timestep_embedder(t, w1, b1, w2, b2, frequency_embedding_size=256,
                      max_period=10000, **kwargs):
    """Convenience one-shot wrapper (prep + apply). Prefer preparing params
    once and reusing them across calls."""
    params = prepare_timestep_embedder_params(
        w1, b1, w2, b2, frequency_embedding_size, max_period)
    return timestep_embedder_apply(t, params, **kwargs)


# ----------------------------------------------------------------------------
# Reference & test
# ----------------------------------------------------------------------------
def _reference(t, w1, b1, w2, b2, frequency_embedding_size=256, max_period=10000):
    half = frequency_embedding_size // 2
    freqs = jnp.exp(-math.log(max_period)
                    * jnp.arange(half, dtype=jnp.float32) / half)
    args = t.astype(jnp.float32)[:, None] * freqs[None]
    emb = jnp.concatenate([jnp.cos(args), jnp.sin(args)], axis=-1)
    if frequency_embedding_size % 2:
        emb = jnp.concatenate([emb, jnp.zeros_like(emb[:, :1])], axis=-1)
    h = emb @ w1 + b1
    h = h * jax.nn.sigmoid(h)
    return h @ w2 + b2


if __name__ == "__main__":
    N = 8                     # batch of timesteps
    FREQ = 256                # frequency_embedding_size (module default)
    HIDDEN = 128              # hidden_size

    key = jax.random.PRNGKey(0)
    k_t, k_w1, k_b1, k_w2, k_b2 = jax.random.split(key, 5)

    t = jax.random.uniform(k_t, (N,), jnp.float32, 0.0, 1000.0)
    # Deterministic synthetic parameters, stored as (in_features, out_features).
    w1 = jax.random.normal(k_w1, (FREQ, HIDDEN), jnp.float32) * 0.02
    b1 = jax.random.normal(k_b1, (HIDDEN,), jnp.float32) * 0.02
    w2 = jax.random.normal(k_w2, (HIDDEN, HIDDEN), jnp.float32) * 0.02
    b2 = jax.random.normal(k_b2, (HIDDEN,), jnp.float32) * 0.02

    # Hoisted, one-time weight prep (pad + bf16 cast).
    params = prepare_timestep_embedder_params(w1, b1, w2, b2,
                                              frequency_embedding_size=FREQ)
    params = jax.tree_util.tree_map(
        lambda x: jax.block_until_ready(x) if isinstance(x, jax.Array) else x,
        params)

    out = timestep_embedder_apply(t, params)
    out = jax.block_until_ready(out)

    ref = _reference(t, w1, b1, w2, b2, frequency_embedding_size=FREQ)
    assert out.shape == (N, HIDDEN)
    # bf16 matmul operands / bf16 output / approx-EUP reciprocal -> loosened
    # tolerance vs the f32 reference.
    assert jnp.allclose(out.astype(jnp.float32), ref, atol=2e-2, rtol=2e-2)

    print("KERNEL_OK")
</pallas_src>

<mosaic_0001>
module attributes {stable_mosaic.version = 11 : i64} {
  func.func @_timestep_embedder_kernel(%arg0: i32, %arg1: i32, %arg2: memref<16x1xf32, #tpu.memory_space<vmem>>, %arg3: memref<1x128xf32, #tpu.memory_space<vmem>>, %arg4: memref<128x128xbf16, #tpu.memory_space<vmem>>, %arg5: memref<128x128xbf16, #tpu.memory_space<vmem>>, %arg6: memref<1x128xf32, #tpu.memory_space<vmem>>, %arg7: memref<128x128xbf16, #tpu.memory_space<vmem>>, %arg8: memref<1x128xf32, #tpu.memory_space<vmem>>, %arg9: memref<16x128xbf16, #tpu.memory_space<vmem>>, %arg10: memref<16x128xbf16, #tpu.memory_space<vmem>>) attributes {dimension_semantics = [#tpu.dimension_semantics<parallel>, #tpu.dimension_semantics<arbitrary>], iteration_bounds = array<i64: 1, 1>, scalar_prefetch = 0 : i64, scratch_operands = 1 : i64, tpu.core_type = #tpu.core_type<tc>, window_params = [{transform_indices = @transform_0, window_bounds = array<i64: 16, 1>}, {pipeline_mode = #tpu.pipeline_mode<synchronous>, transform_indices = @transform_1, window_bounds = array<i64: 1, 128>}, {pipeline_mode = #tpu.pipeline_mode<synchronous>, transform_indices = @transform_2, window_bounds = array<i64: 128, 128>}, {pipeline_mode = #tpu.pipeline_mode<synchronous>, transform_indices = @transform_3, window_bounds = array<i64: 128, 128>}, {pipeline_mode = #tpu.pipeline_mode<synchronous>, transform_indices = @transform_4, window_bounds = array<i64: 1, 128>}, {transform_indices = @transform_5, window_bounds = array<i64: 128, 128>}, {transform_indices = @transform_6, window_bounds = array<i64: 1, 128>}, {transform_indices = @transform_7, window_bounds = array<i64: 16, 128>}]} {
    %c0_i32 = arith.constant 0 : i32
    %0 = arith.cmpi eq, %arg1, %c0_i32 : i32
    %1 = arith.extui %0 : i1 to i32
    %c0_i32_0 = arith.constant 0 : i32
    %2 = arith.cmpi ne, %1, %c0_i32_0 : i32
    scf.if %2 {
      %c0_8 = arith.constant 0 : index
      %c0_9 = arith.constant 0 : index
      %11 = vector.load %arg2[%c0_8, %c0_9] : memref<16x1xf32, #tpu.memory_space<vmem>>, vector<16x1xf32>
      %c0_10 = arith.constant 0 : index
      %c0_11 = arith.constant 0 : index
      %12 = vector.load %arg3[%c0_10, %c0_11] : memref<1x128xf32, #tpu.memory_space<vmem>>, vector<1x128xf32>
      %13 = vector.broadcast %11 : vector<16x1xf32> to vector<16x128xf32>
      %14 = vector.broadcast %12 : vector<1x128xf32> to vector<16x128xf32>
      %15 = arith.mulf %13, %14 : vector<16x128xf32>
      %16 = math.cos %15 : vector<16x128xf32>
      %17 = arith.truncf %16 : vector<16x128xf32> to vector<16x128xbf16>
      %18 = math.sin %15 : vector<16x128xf32>
      %19 = arith.truncf %18 : vector<16x128xf32> to vector<16x128xbf16>
      %c0_12 = arith.constant 0 : index
      %c0_13 = arith.constant 0 : index
      %20 = vector.load %arg4[%c0_12, %c0_13] : memref<128x128xbf16, #tpu.memory_space<vmem>>, vector<128x128xbf16>
      %cst_14 = arith.constant dense<0.000000e+00> : vector<16x128xf32>
      %21 = tpu.matmul %17, %20, %cst_14 {dimension_numbers = #tpu.dot_dimension_numbers<[1], [0], [0], [1], [0, 0, 1, 1], [], []>} : vector<16x128xbf16>, vector<128x128xbf16>, vector<16x128xf32> -> vector<16x128xf32>
      %c0_15 = arith.constant 0 : index
      %c0_16 = arith.constant 0 : index
      %22 = vector.load %arg5[%c0_15, %c0_16] : memref<128x128xbf16, #tpu.memory_space<vmem>>, vector<128x128xbf16>
      %cst_17 = arith.constant dense<0.000000e+00> : vector<16x128xf32>
      %23 = tpu.matmul %19, %22, %cst_17 {dimension_numbers = #tpu.dot_dimension_numbers<[1], [0], [0], [1], [0, 0, 1, 1], [], []>} : vector<16x128xbf16>, vector<128x128xbf16>, vector<16x128xf32> -> vector<16x128xf32>
      %24 = arith.addf %21, %23 : vector<16x128xf32>
      %c0_18 = arith.constant 0 : index
      %c0_19 = arith.constant 0 : index
      %25 = vector.load %arg6[%c0_18, %c0_19] : memref<1x128xf32, #tpu.memory_space<vmem>>, vector<1x128xf32>
      %26 = vector.broadcast %25 : vector<1x128xf32> to vector<16x128xf32>
      %27 = arith.addf %24, %26 : vector<16x128xf32>
      %cst_20 = arith.constant 0.000000e+00 : f32
      %28 = vector.broadcast %cst_20 : f32 to vector<16x128xf32>
      %29 = arith.subf %28, %27 : vector<16x128xf32>
      %30 = math.exp %29 : vector<16x128xf32>
      %cst_21 = arith.constant 1.000000e+00 : f32
      %31 = vector.broadcast %cst_21 : f32 to vector<16x128xf32>
      %32 = arith.addf %31, %30 : vector<16x128xf32>
      %33 = tpu.reciprocal %32 {approx = true} : vector<16x128xf32> -> vector<16x128xf32>
      %34 = arith.mulf %27, %33 : vector<16x128xf32>
      %35 = arith.truncf %34 : vector<16x128xf32> to vector<16x128xbf16>
      %c0_22 = arith.constant 0 : index
      %c0_23 = arith.constant 0 : index
      %36 = vector.load %arg10[%c0_22, %c0_23] : memref<16x128xbf16, #tpu.memory_space<vmem>>, vector<16x128xbf16>
      tpu.vector_store %arg10[%c0_22, %c0_23], %35 {strides = array<i32>} : memref<16x128xbf16, #tpu.memory_space<vmem>>, vector<16x128xbf16>,
    } else {
    }
    %c0 = arith.constant 0 : index
    %c0_1 = arith.constant 0 : index
    %3 = vector.load %arg10[%c0, %c0_1] : memref<16x128xbf16, #tpu.memory_space<vmem>>, vector<16x128xbf16>
    %c0_2 = arith.constant 0 : index
    %c0_3 = arith.constant 0 : index
    %4 = vector.load %arg7[%c0_2, %c0_3] : memref<128x128xbf16, #tpu.memory_space<vmem>>, vector<128x128xbf16>
    %cst = arith.constant dense<0.000000e+00> : vector<16x128xf32>
    %5 = tpu.matmul %3, %4, %cst {dimension_numbers = #tpu.dot_dimension_numbers<[1], [0], [0], [1], [0, 0, 1, 1], [], []>} : vector<16x128xbf16>, vector<128x128xbf16>, vector<16x128xf32> -> vector<16x128xf32>
    %c0_4 = arith.constant 0 : index
    %c0_5 = arith.constant 0 : index
    %6 = vector.load %arg8[%c0_4, %c0_5] : memref<1x128xf32, #tpu.memory_space<vmem>>, vector<1x128xf32>
    %7 = vector.broadcast %6 : vector<1x128xf32> to vector<16x128xf32>
    %8 = arith.addf %5, %7 : vector<16x128xf32>
    %9 = arith.truncf %8 : vector<16x128xf32> to vector<16x128xbf16>
    %c0_6 = arith.constant 0 : index
    %c0_7 = arith.constant 0 : index
    %10 = vector.load %arg9[%c0_6, %c0_7] : memref<16x128xbf16, #tpu.memory_space<vmem>>, vector<16x128xbf16>
    tpu.vector_store %arg9[%c0_6, %c0_7], %9 {strides = array<i32>} : memref<16x128xbf16, #tpu.memory_space<vmem>>, vector<16x128xbf16>,
    return
  }
  func.func @transform_0(%arg0: i32, %arg1: i32) -> (i32, i32) {
    %c0_i32 = arith.constant 0 : i32
    %c0_i32_0 = arith.constant 0 : i32
    return %arg0, %c0_i32 : i32, i32
  }
  func.func @transform_1(%arg0: i32, %arg1: i32) -> (i32, i32) {
    %c0_i32 = arith.constant 0 : i32
    %c0_i32_0 = arith.constant 0 : i32
    %c0_i32_1 = arith.constant 0 : i32
    return %c0_i32, %c0_i32_0 : i32, i32
  }
  func.func @transform_2(%arg0: i32, %arg1: i32) -> (i32, i32) {
    %c0_i32 = arith.constant 0 : i32
    %c0_i32_0 = arith.constant 0 : i32
    %c0_i32_1 = arith.constant 0 : i32
    return %c0_i32, %c0_i32_0 : i32, i32
  }
  func.func @transform_3(%arg0: i32, %arg1: i32) -> (i32, i32) {
    %c0_i32 = arith.constant 0 : i32
    %c0_i32_0 = arith.constant 0 : i32
    %c0_i32_1 = arith.constant 0 : i32
    return %c0_i32, %c0_i32_0 : i32, i32
  }
  func.func @transform_4(%arg0: i32, %arg1: i32) -> (i32, i32) {
    %c0_i32 = arith.constant 0 : i32
    %c0_i32_0 = arith.constant 0 : i32
    %c0_i32_1 = arith.constant 0 : i32
    return %c0_i32, %c0_i32_0 : i32, i32
  }
  func.func @transform_5(%arg0: i32, %arg1: i32) -> (i32, i32) {
    %c0_i32 = arith.constant 0 : i32
    %c0_i32_0 = arith.constant 0 : i32
    return %c0_i32, %arg1 : i32, i32
  }
  func.func @transform_6(%arg0: i32, %arg1: i32) -> (i32, i32) {
    %c0_i32 = arith.constant 0 : i32
    %c0_i32_0 = arith.constant 0 : i32
    return %c0_i32, %arg1 : i32, i32
  }
  func.func @transform_7(%arg0: i32, %arg1: i32) -> (i32, i32) {
    %c0_i32 = arith.constant 0 : i32
    return %arg0, %arg1 : i32, i32
  }
}

module attributes {stable_mosaic.version = 11 : i64} {
  func.func @_timestep_embedder_kernel(%arg0: i32, %arg1: i32, %arg2: memref<16x1xf32, #tpu.memory_space<vmem>>, %arg3: memref<1x128xf32, #tpu.memory_space<vmem>>, %arg4: memref<128x128xbf16, #tpu.memory_space<vmem>>, %arg5: memref<128x128xbf16, #tpu.memory_space<vmem>>, %arg6: memref<1x128xf32, #tpu.memory_space<vmem>>, %arg7: memref<128x128xbf16, #tpu.memory_space<vmem>>, %arg8: memref<1x128xf32, #tpu.memory_space<vmem>>, %arg9: memref<16x128xbf16, #tpu.memory_space<vmem>>, %arg10: memref<16x128xbf16, #tpu.memory_space<vmem>>) attributes {dimension_semantics = [#tpu.dimension_semantics<parallel>, #tpu.dimension_semantics<arbitrary>], iteration_bounds = array<i64: 1, 1>, scalar_prefetch = 0 : i64, scratch_operands = 1 : i64, tpu.core_type = #tpu.core_type<tc>, window_params = [{transform_indices = @transform_0, window_bounds = array<i64: 16, 1>}, {pipeline_mode = #tpu.pipeline_mode<synchronous>, transform_indices = @transform_1, window_bounds = array<i64: 1, 128>}, {pipeline_mode = #tpu.pipeline_mode<synchronous>, transform_indices = @transform_2, window_bounds = array<i64: 128, 128>}, {pipeline_mode = #tpu.pipeline_mode<synchronous>, transform_indices = @transform_3, window_bounds = array<i64: 128, 128>}, {pipeline_mode = #tpu.pipeline_mode<synchronous>, transform_indices = @transform_4, window_bounds = array<i64: 1, 128>}, {transform_indices = @transform_5, window_bounds = array<i64: 128, 128>}, {transform_indices = @transform_6, window_bounds = array<i64: 1, 128>}, {transform_indices = @transform_7, window_bounds = array<i64: 16, 128>}]} {
    %c0_i32 = arith.constant 0 : i32
    %0 = arith.cmpi eq, %arg1, %c0_i32 : i32
    %1 = arith.extui %0 : i1 to i32
    %c0_i32_0 = arith.constant 0 : i32
    %2 = arith.cmpi ne, %1, %c0_i32_0 : i32
    scf.if %2 {
      %c0_8 = arith.constant 0 : index
      %c0_9 = arith.constant 0 : index
      %11 = vector.load %arg2[%c0_8, %c0_9] : memref<16x1xf32, #tpu.memory_space<vmem>>, vector<16x1xf32>
      %c0_10 = arith.constant 0 : index
      %c0_11 = arith.constant 0 : index
      %12 = vector.load %arg3[%c0_10, %c0_11] : memref<1x128xf32, #tpu.memory_space<vmem>>, vector<1x128xf32>
      %13 = vector.broadcast %11 : vector<16x1xf32> to vector<16x128xf32>
      %14 = vector.broadcast %12 : vector<1x128xf32> to vector<16x128xf32>
      %15 = arith.mulf %13, %14 : vector<16x128xf32>
      %16 = math.cos %15 : vector<16x128xf32>
      %17 = arith.truncf %16 : vector<16x128xf32> to vector<16x128xbf16>
      %18 = math.sin %15 : vector<16x128xf32>
      %19 = arith.truncf %18 : vector<16x128xf32> to vector<16x128xbf16>
      %c0_12 = arith.constant 0 : index
      %c0_13 = arith.constant 0 : index
      %20 = vector.load %arg4[%c0_12, %c0_13] : memref<128x128xbf16, #tpu.memory_space<vmem>>, vector<128x128xbf16>
      %cst_14 = arith.constant dense<0.000000e+00> : vector<16x128xf32>
      %21 = tpu.matmul %17, %20, %cst_14 {dimension_numbers = #tpu.dot_dimension_numbers<[1], [0], [0], [1], [0, 0, 1, 1], [], []>} : vector<16x128xbf16>, vector<128x128xbf16>, vector<16x128xf32> -> vector<16x128xf32>
      %c0_15 = arith.constant 0 : index
      %c0_16 = arith.constant 0 : index
      %22 = vector.load %arg5[%c0_15, %c0_16] : memref<128x128xbf16, #tpu.memory_space<vmem>>, vector<128x128xbf16>
      %cst_17 = arith.constant dense<0.000000e+00> : vector<16x128xf32>
      %23 = tpu.matmul %19, %22, %cst_17 {dimension_numbers = #tpu.dot_dimension_numbers<[1], [0], [0], [1], [0, 0, 1, 1], [], []>} : vector<16x128xbf16>, vector<128x128xbf16>, vector<16x128xf32> -> vector<16x128xf32>
      %24 = arith.addf %21, %23 : vector<16x128xf32>
      %c0_18 = arith.constant 0 : index
      %c0_19 = arith.constant 0 : index
      %25 = vector.load %arg6[%c0_18, %c0_19] : memref<1x128xf32, #tpu.memory_space<vmem>>, vector<1x128xf32>
      %26 = vector.broadcast %25 : vector<1x128xf32> to vector<16x128xf32>
      %27 = arith.addf %24, %26 : vector<16x128xf32>
      %cst_20 = arith.constant 0.000000e+00 : f32
      %28 = vector.broadcast %cst_20 : f32 to vector<16x128xf32>
      %29 = arith.subf %28, %27 : vector<16x128xf32>
      %30 = math.exp %29 : vector<16x128xf32>
      %cst_21 = arith.constant 1.000000e+00 : f32
      %31 = vector.broadcast %cst_21 : f32 to vector<16x128xf32>
      %32 = arith.addf %31, %30 : vector<16x128xf32>
      %33 = tpu.reciprocal %32 {approx = true} : vector<16x128xf32> -> vector<16x128xf32>
      %34 = arith.mulf %27, %33 : vector<16x128xf32>
      %35 = arith.truncf %34 : vector<16x128xf32> to vector<16x128xbf16>
      %c0_22 = arith.constant 0 : index
      %c0_23 = arith.constant 0 : index
      %36 = vector.load %arg10[%c0_22, %c0_23] : memref<16x128xbf16, #tpu.memory_space<vmem>>, vector<16x128xbf16>
      tpu.vector_store %arg10[%c0_22, %c0_23], %35 {strides = array<i32>} : memref<16x128xbf16, #tpu.memory_space<vmem>>, vector<16x128xbf16>,
    } else {
    }
    %c0 = arith.constant 0 : index
    %c0_1 = arith.constant 0 : index
    %3 = vector.load %arg10[%c0, %c0_1] : memref<16x128xbf16, #tpu.memory_space<vmem>>, vector<16x128xbf16>
    %c0_2 = arith.constant 0 : index
    %c0_3 = arith.constant 0 : index
    %4 = vector.load %arg7[%c0_2, %c0_3] : memref<128x128xbf16, #tpu.memory_space<vmem>>, vector<128x128xbf16>
    %cst = arith.constant dense<0.000000e+00> : vector<16x128xf32>
    %5 = tpu.matmul %3, %4, %cst {dimension_numbers = #tpu.dot_dimension_numbers<[1], [0], [0], [1], [0, 0, 1, 1], [], []>} : vector<16x128xbf16>, vector<128x128xbf16>, vector<16x128xf32> -> vector<16x128xf32>
    %c0_4 = arith.constant 0 : index
    %c0_5 = arith.constant 0 : index
    %6 = vector.load %arg8[%c0_4, %c0_5] : memref<1x128xf32, #tpu.memory_space<vmem>>, vector<1x128xf32>
    %7 = vector.broadcast %6 : vector<1x128xf32> to vector<16x128xf32>
    %8 = arith.addf %5, %7 : vector<16x128xf32>
    %9 = arith.truncf %8 : vector<16x128xf32> to vector<16x128xbf16>
    %c0_6 = arith.constant 0 : index
    %c0_7 = arith.constant 0 : index
    %10 = vector.load %arg9[%c0_6, %c0_7] : memref<16x128xbf16, #tpu.memory_space<vmem>>, vector<16x128xbf16>
    tpu.vector_store %arg9[%c0_6, %c0_7], %9 {strides = array<i32>} : memref<16x128xbf16, #tpu.memory_space<vmem>>, vector<16x128xbf16>,
    return
  }
  func.func @transform_0(%arg0: i32, %arg1: i32) -> (i32, i32) {
    %c0_i32 = arith.constant 0 : i32
    %c0_i32_0 = arith.constant 0 : i32
    return %arg0, %c0_i32 : i32, i32
  }
  func.func @transform_1(%arg0: i32, %arg1: i32) -> (i32, i32) {
    %c0_i32 = arith.constant 0 : i32
    %c0_i32_0 = arith.constant 0 : i32
    %c0_i32_1 = arith.constant 0 : i32
    return %c0_i32, %c0_i32_0 : i32, i32
  }
  func.func @transform_2(%arg0: i32, %arg1: i32) -> (i32, i32) {
    %c0_i32 = arith.constant 0 : i32
    %c0_i32_0 = arith.constant 0 : i32
    %c0_i32_1 = arith.constant 0 : i32
    return %c0_i32, %c0_i32_0 : i32, i32
  }
  func.func @transform_3(%arg0: i32, %arg1: i32) -> (i32, i32) {
    %c0_i32 = arith.constant 0 : i32
    %c0_i32_0 = arith.constant 0 : i32
    %c0_i32_1 = arith.constant 0 : i32
    return %c0_i32, %c0_i32_0 : i32, i32
  }
  func.func @transform_4(%arg0: i32, %arg1: i32) -> (i32, i32) {
    %c0_i32 = arith.constant 0 : i32
    %c0_i32_0 = arith.constant 0 : i32
    %c0_i32_1 = arith.constant 0 : i32
    return %c0_i32, %c0_i32_0 : i32, i32
  }
  func.func @transform_5(%arg0: i32, %arg1: i32) -> (i32, i32) {
    %c0_i32 = arith.constant 0 : i32
    %c0_i32_0 = arith.constant 0 : i32
    return %c0_i32, %arg1 : i32, i32
  }
  func.func @transform_6(%arg0: i32, %arg1: i32) -> (i32, i32) {
    %c0_i32 = arith.constant 0 : i32
    %c0_i32_0 = arith.constant 0 : i32
    return %c0_i32, %arg1 : i32, i32
  }
  func.func @transform_7(%arg0: i32, %arg1: i32) -> (i32, i32) {
    %c0_i32 = arith.constant 0 : i32
    return %arg0, %arg1 : i32, i32
  }
}

</mosaic_0001>

<bundles_post_ra>
// kernel: tpu_custom_call.1
= control target key start
LH: loop header
LB: loop body
LE: loop exit
PB: predicated region body
PF: predicated region fallthrough
CT: control target
= control target key end

     0   :  { %12 = vsyncpa [#allocation4], 0  ;;  %s1425_s0 = inlined_call_operand.vmem [shape: f32[16,1], index: 0, kind: input, shape index: {}]   ;;  %s1426_s1 = inlined_call_operand.vmem [shape: f32[1,128], index: 1, kind: input, shape index: {}]   ;;  %s1427_s2 = inlined_call_operand.hbm [shape: bf16[128,128], index: 2, kind: input, shape index: {}]   ;;  %s1428_s3 = inlined_call_operand.hbm [shape: bf16[128,128], index: 3, kind: input, shape index: {}]   ;;  %s1429_s4 = inlined_call_operand.vmem [shape: f32[1,128], index: 4, kind: input, shape index: {}]   ;;  %s1430_s5 = inlined_call_operand.hbm [shape: bf16[128,128], index: 5, kind: input, shape index: {}]   ;;  %s1431_s6 = inlined_call_operand.vmem [shape: f32[1,128], index: 6, kind: input, shape index: {}]   ;;  %s1432_s7 = inlined_call_operand.hbm [shape: bf16[16,128], index: 7, kind: output, shape index: {}]  }
   0x1   :  { %13 = vsyncpa [#allocation7], 0 }
   0x2   :  { %14 = vsyncpa [#allocation5], 0  ;;  %s1181_s24 = smov [#allocation6]   ;;  %s1182_s26 = smov [#allocation3]  }
   0x3   :  { %s36_s25 = sshll.u32 %s1181_s24, 4  ;;  %s24_s27 = sshll.u32 %s1182_s26, 4  ;;  %s37_s25 = int_to_ptr.vmem [resolvable:$true] %s36_s25  ;;  %s1236_s27 = int_to_ptr.vmem [resolvable:$true] %s24_s27 }
   0x4   :  { %s1087_s30 = scalar_lea.hbm %s1428_s3, 1024 }
   0x5   :  { %p1088_p0 = scmp.ne.s32.totalorder %s1428_s3, %s1087_s30  ;;  %p1091_p1 = scmp.lt.u32.totalorder %s1087_s30, %s1428_s3 }
   0x7   :  { %p1093_p2 = pnand %p1091_p1, %p1088_p0 }
   0x9   :  { %1096 = shalt.err (!%p1093_p2)
}
   0xa   :  { %s1097_s12 = scalar_lea.vmem %s37_s25, 1024  ;;  %p1102_p4 = scmp.lt.s32.totalorder %s37_s25, %s37_s25 }
   0xb   :  { %p1098_p3 = scmp.ne.s32.totalorder %s37_s25, %s1097_s12  ;;  %p1103_p5 = scmp.lt.s32.totalorder %s1097_s12, %s1097_s12 }
   0xd   :  { %p1104_p6 = por %p1103_p5, %p1102_p4 }
   0xf   :  { %p1105_p7 = pnand %p1104_p6, %p1098_p3 }
  0x11   :  { %1108 = shalt.err (!%p1105_p7)
}
  0x12   :  { %s1183_s13 = smov 64   ;;  %s1184_s14 = smov 4  }
  0x13   :  { %42 = dma.hbm_to_vmem [thread:$0]  %s1428_s3, 1024, %s37_s25, [#allocation7], %s1183_s13, %s1183_s13, %s1184_s14  }
  0x14   :  { %s1109_s19 = scalar_lea.hbm %s1427_s2, 1024 }
  0x15   :  { %p1110_p8 = scmp.ne.s32.totalorder %s1427_s2, %s1109_s19  ;;  %p1113_p9 = scmp.lt.u32.totalorder %s1109_s19, %s1427_s2 }
  0x17   :  { %p1115_p10 = pnand %p1113_p9, %p1110_p8 }
  0x19   :  { %1118 = shalt.err (!%p1115_p10)
}
  0x1a   :  { %s1119_s24 = scalar_lea.vmem %s1236_s27, 1024  ;;  %p1124_p12 = scmp.lt.s32.totalorder %s1236_s27, %s1236_s27 }
  0x1b   :  { %p1120_p11 = scmp.ne.s32.totalorder %s1236_s27, %s1119_s24  ;;  %p1125_p13 = scmp.lt.s32.totalorder %s1119_s24, %s1119_s24 }
  0x1d   :  { %p1126_p0 = por %p1125_p13, %p1124_p12 }
  0x1f   :  { %p1127_p1 = pnand %p1126_p0, %p1120_p11 }
  0x21   :  { %1130 = shalt.err (!%p1127_p1)
}
  0x22   :  { %30 = dma.hbm_to_vmem [thread:$0]  %s1427_s2, 1024, %s1236_s27, [#allocation4], %s1183_s13, %s1183_s13, %s1184_s14  }
  0x23   :  { %s1185_s26 = smov [#allocation8]   ;;  %s1131_s8 = scalar_lea.hbm %s1430_s5, 1024 }
  0x24   :  { %s50_s28 = sshll.u32 %s1185_s26, 4  ;;  %p1132_p2 = scmp.ne.s32.totalorder %s1430_s5, %s1131_s8  ;;  %s51_s28 = int_to_ptr.vmem [resolvable:$true] %s50_s28 }
  0x25   :  { %p1135_p3 = scmp.lt.u32.totalorder %s1131_s8, %s1430_s5 }
  0x27   :  { %p1137_p4 = pnand %p1135_p3, %p1132_p2 }
  0x29   :  { %1140 = shalt.err (!%p1137_p4)
}
  0x2a   :  { %s1141_s15 = scalar_lea.vmem %s51_s28, 1024  ;;  %p1146_p6 = scmp.lt.s32.totalorder %s51_s28, %s51_s28 }
  0x2b   :  { %p1142_p5 = scmp.ne.s32.totalorder %s51_s28, %s1141_s15  ;;  %p1147_p7 = scmp.lt.s32.totalorder %s1141_s15, %s1141_s15 }
  0x2d   :  { %p1148_p8 = por %p1147_p7, %p1146_p6 }
  0x2f   :  { %p1149_p9 = pnand %p1148_p8, %p1142_p5 }
  0x31   :  { %1152 = shalt.err (!%p1149_p9)
}
  0x32   :  { %56 = dma.hbm_to_vmem [thread:$0]  %s1430_s5, 1024, %s51_s28, [#allocation7], %s1183_s13, %s1183_s13, %s1184_s14  }
  0x33   :  { %1175 = dma.done.wait [#allocation4], 1024  }
  0x34   :  { %1176 = vsyncadd [#allocation4], 4294966272 }
  0x35   :  { %1177 = dma.done.wait [#allocation7], 2048  }
  0x36   :  { %1178 = vsyncadd [#allocation7], 4294965248  ;;  %v1186_v0 = vmov 0   ;;  %v73_v1 = vld [vmem:[%s1425_s0] sm:$0xff]  ;;  %v74_v2 = vld [vmem:[%s1425_s0 + $0x8] sm:$0xff]  ;;  %v1187_v5 = vmov 0.0  }
  0x37   :  { %1046 = vset.pattern.permute.xlu0 %v1186_v0  ;;  %v1047_v3 = vld [vmem:[#allocation6] sm:$0xff]   ;;  %963 = vmatprep.subr.bf16.mxu0 %v1187_v5  ;;  %v1049_v6 = vld [vmem:[#allocation6 + $0x8] sm:$0xff]   ;;  %v1051_v8 = vld [vmem:[#allocation6 + $0x10] sm:$0xff]   ;;  %vm1188_vm0 = vmmov 0   ;;  %v1189_v41 = vmov 683565275  }
  0x38   :  { %78 = vperm.xlu0 %1046, %v73_v1   ;;  %v1048_v4 = vld [vmem:[#allocation3] sm:$0xff]   ;;  %983 = vmatprep.subr.bf16.mxu1 %v1187_v5  ;;  %v1050_v7 = vld [vmem:[#allocation3 + $0x8] sm:$0xff]   ;;  %v1052_v9 = vld [vmem:[#allocation3 + $0x10] sm:$0xff]   ;;  %v1190_v45 = vmov 2475754826   ;;  %s1195_s22 = smov [#allocation9]  }
  0x39   :  { %964 = vmatpush3.bf16.msra.mxu0 %v1047_v3  ;;  %984 = vmatpush3.bf16.msra.mxu1 %v1048_v4  ;;  %v1053_v10 = vld [vmem:[#allocation6 + $0x18] sm:$0xff]   ;;  %v1055_v12 = vld [vmem:[#allocation6 + $0x20] sm:$0xff]   ;;  %v1057_v14 = vld [vmem:[#allocation6 + $0x28] sm:$0xff]   ;;  %v1191_v47 = vmov 2131351028   ;;  %s871_s23 = sshll.u32 %s1195_s22, 4  ;;  %s872_s23 = int_to_ptr.vmem [resolvable:$true] %s871_s23 }
  0x3a   :  { %965 = vmatprep.subr.bf16.mxu0 %v1187_v5  ;;  %985 = vmatprep.subr.bf16.mxu1 %v1187_v5  ;;  %v1054_v11 = vld [vmem:[#allocation3 + $0x18] sm:$0xff]   ;;  %v1056_v13 = vld [vmem:[#allocation3 + $0x20] sm:$0xff]   ;;  %v1058_v15 = vld [vmem:[#allocation3 + $0x28] sm:$0xff]   ;;  %v1192_v49 = vmov 2102212464   ;;  %s1153_s24 = scalar_lea.vmem %s872_s23, 128  ;;  %p1158_p11 = scmp.lt.s32.totalorder %s872_s23, %s872_s23 }
  0x3b   :  { %979 = vmatprep.mubr.msk.bf16.mxu0 %vm1188_vm0, %v1187_v5  ;;  %999 = vmatprep.mubr.msk.bf16.mxu1 %vm1188_vm0, %v1187_v5  ;;  %v1059_v16 = vld [vmem:[#allocation6 + $0x30] sm:$0xff]   ;;  %v1061_v18 = vld [vmem:[#allocation6 + $0x38] sm:$0xff]   ;;  %v884_v20 = vld [vmem:[%s1426_s1] ss:$0 sm:$0xff]  ;;  %v1193_v51 = vmov 920167782   ;;  %p1154_p10 = scmp.ne.s32.totalorder %s872_s23, %s1153_s24  ;;  %p1159_p12 = scmp.lt.s32.totalorder %s1153_s24, %s1153_s24 }
  0x3c   :  { %83 = vperm.xlu0 %1046, %v74_v2   ;;  %v1060_v17 = vld [vmem:[#allocation3 + $0x30] sm:$0xff]   ;;  %v1062_v19 = vld [vmem:[#allocation3 + $0x38] sm:$0xff]   ;;  %v1194_v58 = vmov 1326507024  }
  0x3d   :  { %966 = vmatpush3.bf16.msra.mxu0 %v1049_v6  ;;  %986 = vmatpush3.bf16.msra.mxu1 %v1050_v7  ;;  %p1160_p13 = por %p1159_p12, %p1158_p11 }
  0x3e   :  { %967 = vmatprep.subr.bf16.mxu0 %v1187_v5  ;;  %987 = vmatprep.subr.bf16.mxu1 %v1187_v5 }
  0x3f   :  { %p1161_p0 = pnand %p1160_p13, %p1154_p10 }
  0x41   :  { %968 = vmatpush3.bf16.msra.mxu0 %v1051_v8  ;;  %988 = vmatpush3.bf16.msra.mxu1 %v1052_v9 }
  0x42   :  { %969 = vmatprep.subr.bf16.mxu0 %v1187_v5  ;;  %989 = vmatprep.subr.bf16.mxu1 %v1187_v5 }
  0x45   :  { %970 = vmatpush3.bf16.msra.mxu0 %v1053_v10  ;;  %990 = vmatpush3.bf16.msra.mxu1 %v1054_v11 }
  0x46   :  { %971 = vmatprep.subr.bf16.mxu0 %v1187_v5  ;;  %991 = vmatprep.subr.bf16.mxu1 %v1187_v5 }
  0x49   :  { %972 = vmatpush3.bf16.msra.mxu0 %v1055_v12  ;;  %992 = vmatpush3.bf16.msra.mxu1 %v1056_v13 }
  0x4a   :  { %973 = vmatprep.subr.bf16.mxu0 %v1187_v5  ;;  %993 = vmatprep.subr.bf16.mxu1 %v1187_v5 }
  0x4d   :  { %974 = vmatpush3.bf16.msra.mxu0 %v1057_v14  ;;  %994 = vmatpush3.bf16.msra.mxu1 %v1058_v15 }
  0x4e   :  { %975 = vmatprep.subr.bf16.mxu0 %v1187_v5  ;;  %995 = vmatprep.subr.bf16.mxu1 %v1187_v5 }
  0x51   :  { %976 = vmatpush3.bf16.msra.mxu0 %v1059_v16  ;;  %996 = vmatpush3.bf16.msra.mxu1 %v1060_v17 }
  0x52   :  { %977 = vmatprep.subr.bf16.mxu0 %v1187_v5  ;;  %997 = vmatprep.subr.bf16.mxu1 %v1187_v5 }
  0x55   :  { %978 = vmatpush3.bf16.msra.mxu0 %v1061_v18  ;;  %998 = vmatpush3.bf16.msra.mxu1 %v1062_v19 }
  0x56   :  { %1003 = vmatprep.subr.bf16.mxu0 %v1187_v5 }
  0xb7   :  { %v79_v21 = vpop.permute.xlu0 %78 }
  0xb8   :  { %v1318_v22 = vmul.f32 %v884_v20, %v79_v21 }
  0xba   :  { %v94_v23 = vand.u32 2147483647, %v1318_v22  ;;  %v97_v24 = vand.u32 2139095040, %v1318_v22  ;;  %vm96_vm15 = vcmp.lt.s32.totalorder %v1318_v22, 0 }
  0xbb   :  { %v84_v25 = vpop.permute.xlu0 %83 }
  0xbc   :  { %v98_v26 = vshrl.u32 %v97_v24, 23  ;;  %v1322_v27 = vmul.f32 %v884_v20, %v84_v25  ;;  %v101_v28 = vand.u32 8388607, %v94_v23 }
  0xbe   :  { %v885_v29 = vadd.s32 4294967169, %v98_v26  ;;  %v200_v30 = vand.u32 2139095040, %v1322_v27  ;;  %v102_v32 = vor.u32 8388608, %v101_v28  ;;  %v197_v34 = vand.u32 2147483647, %v1322_v27 }
  0xc0   :  { %v104_v31 = vadd.s32 1, %v885_v29  ;;  %v201_v33 = vshrl.u32 %v200_v30, 23  ;;  %v1328_v39 = vshll.u32 %v102_v32, 8  ;;  %v204_v43 = vand.u32 8388607, %v197_v34 }
  0xc2   :  { %vm105_vm1 = vcmp.gt.s32.totalorder %v104_v31, 0  ;;  %v889_v36 = vadd.s32 4294967169, %v201_v33  ;;  %v205_v10 = vor.u32 8388608, %v204_v43 }
  0xc3   :  { %v106_v35 = vsel %vm105_vm1, %v104_v31, 0  ;;  %vm1376_vm1 = vcmp.le.f32.partialorder %v94_v23, 0.7853982 }
  0xc4   :  { %v107_v37 = vshrl.u32 %v106_v35, 5  ;;  %v108_v38 = vand.u32 31, %v106_v35  ;;  %v207_v44 = vadd.s32 1, %v889_v36  ;;  %v245_v25 = vshll.u32 %v205_v10, 8 }
  0xc6   :  { %v109_v40 = vsub.s32 32, %v108_v38  ;;  %v111_v42 = vshll.u32 %v1189_v41, %v108_v38  ;;  %v114_v46 = vshll.u32 %v1190_v45, %v108_v38  ;;  %v117_v48 = vshll.u32 %v1191_v47, %v108_v38 }
  0xc7   :  { %v120_v50 = vshll.u32 %v1192_v49, %v108_v38  ;;  %v123_v52 = vshll.u32 %v1193_v51, %v108_v38  ;;  %vm126_vm2 = vcmp.lt.s32.totalorder %v107_v37, 1  ;;  %vm128_vm3 = vcmp.lt.s32.totalorder %v107_v37, 3 }
  0xc8   :  { %v112_v53 = vshrl.u32 %v1190_v45, %v109_v40  ;;  %v115_v54 = vshrl.u32 %v1191_v47, %v109_v40  ;;  %v118_v55 = vshrl.u32 %v1192_v49, %v109_v40  ;;  %v110_v56 = vshrl.u32 %v1189_v41, %v109_v40 }
  0xc9   :  { %v121_v57 = vshrl.u32 %v1193_v51, %v109_v40  ;;  %v124_v59 = vshrl.u32 %v1194_v58, %v109_v40  ;;  %vm208_vm4 = vcmp.gt.s32.totalorder %v207_v44, 0  ;;  %vm129_vm5 = vcmp.lt.s32.totalorder %v107_v37, 4 }
  0xca   :  { %v113_v60 = vor.u32 %v112_v53, %v111_v42  ;;  %v116_v61 = vor.u32 %v115_v54, %v114_v46  ;;  %v119_v62 = vor.u32 %v118_v55, %v117_v48  ;;  %v209_v1 = vsel %vm208_vm4, %v207_v44, 0 }
  0xcb   :  { %v122_v63 = vor.u32 %v121_v57, %v120_v50  ;;  %v125_v0 = vor.u32 %v124_v59, %v123_v52  ;;  %vm127_vm6 = vcmp.lt.s32.totalorder %v107_v37, 2  ;;  %v211_v13 = vand.u32 31, %v209_v1 }
  0xcc   :  { %v130_v2 = vsel %vm126_vm2, %v110_v56, %v113_v60  ;;  %v131_v3 = vsel %vm129_vm5, %v119_v62, 2102212464  ;;  %v134_v4 = vsel %vm126_vm2, %v113_v60, %v116_v61  ;;  %v138_v6 = vsel %vm126_vm2, %v116_v61, %v119_v62 }
  0xcd   :  { %v132_v7 = vsel %vm128_vm3, %v116_v61, %v131_v3  ;;  %v135_v8 = vsel %vm129_vm5, %v122_v63, 920167782  ;;  %v139_v9 = vsel %vm129_vm5, %v125_v0, 1326507024  ;;  %v210_v21 = vshrl.u32 %v209_v1, 5 }
  0xce   :  { %v136_v11 = vsel %vm128_vm3, %v119_v62, %v135_v8  ;;  %v140_v12 = vsel %vm128_vm3, %v122_v63, %v139_v9  ;;  %v133_v14 = vsel %vm127_vm6, %v130_v2, %v132_v7  ;;  %v212_v24 = vsub.s32 32, %v211_v13 }
  0xcf   :  { %v137_v15 = vsel %vm127_vm6, %v134_v4, %v136_v11  ;;  %v141_v16 = vsel %vm127_vm6, %v138_v6, %v140_v12  ;;  %v149_v26 = vmul.u32 %v1328_v39, %v133_v14  ;;  %v214_v28 = vshll.u32 %v1189_v41, %v211_v13 }
  0xd0   :  { %v1341_v17 = vmul.u32.u64.low %v1328_v39, %v141_v16  ;;  %v1342_v18 = vmul.u32.u64.high %v1328_v39, %v141_v16, %v1341_v17  ;;  %v1345_v19 = vmul.u32.u64.low %v1328_v39, %v137_v15  ;;  %v1346_v20 = vmul.u32.u64.high %v1328_v39, %v137_v15, %v1345_v19 }
  0xd1   :  { %v217_v29 = vshll.u32 %v1190_v45, %v211_v13  ;;  %v220_v30 = vshll.u32 %v1191_v47, %v211_v13  ;;  %v215_v31 = vshrl.u32 %v1190_v45, %v212_v24  ;;  %v218_v32 = vshrl.u32 %v1191_v47, %v212_v24 }
  0xd2   :  { %v221_v33 = vshrl.u32 %v1192_v49, %v212_v24  ;;  %v223_v35 = vshll.u32 %v1192_v49, %v211_v13  ;;  %vm151_vm7 = vc.u32 %v1342_v18, %v1345_v19  ;;  %v152_v36 = vadd.s32 1, %v1346_v20 }
  0xd3   :  { %v224_v37 = vshrl.u32 %v1193_v51, %v212_v24  ;;  %v226_v38 = vshll.u32 %v1193_v51, %v211_v13  ;;  %v216_v40 = vor.u32 %v215_v31, %v214_v28  ;;  %v219_v42 = vor.u32 %v218_v32, %v217_v29 }
  0xd4   :  { %v222_v43 = vor.u32 %v221_v33, %v220_v30  ;;  %v227_v44 = vshrl.u32 %v1194_v58, %v212_v24  ;;  %v153_v39 = vsel %vm151_vm7, %v152_v36, %v1346_v20  ;;  %vm229_vm8 = vcmp.lt.s32.totalorder %v210_v21, 1 }
  0xd5   :  { %v225_v46 = vor.u32 %v224_v37, %v223_v35  ;;  %vm232_vm9 = vcmp.lt.s32.totalorder %v210_v21, 4  ;;  %v154_v45 = vadd.s32 %v153_v39, %v149_v26  ;;  %vm231_vm10 = vcmp.lt.s32.totalorder %v210_v21, 3 }
  0xd6   :  { %v228_v47 = vor.u32 %v227_v44, %v226_v38  ;;  %v234_v48 = vsel %vm232_vm9, %v222_v43, 2102212464  ;;  %v213_v49 = vshrl.u32 %v1189_v41, %v212_v24  ;;  %v237_v50 = vsel %vm229_vm8, %v216_v40, %v219_v42 }
  0xd7   :  { %v238_v52 = vsel %vm232_vm9, %v225_v46, 920167782  ;;  %v241_v53 = vsel %vm229_vm8, %v219_v42, %v222_v43  ;;  %v155_v54 = vadd.s32 536870912, %v154_v45  ;;  %vm230_vm11 = vcmp.lt.s32.totalorder %v210_v21, 2 }
  0xd8   :  { %v239_v51 = vsel %vm231_vm10, %v222_v43, %v238_v52  ;;  %v242_v55 = vsel %vm232_vm9, %v228_v47, 1326507024  ;;  %v233_v56 = vsel %vm229_vm8, %v213_v49, %v216_v40  ;;  %v235_v57 = vsel %vm231_vm10, %v219_v42, %v234_v48 }
  0xd9   :  { %v240_v58 = vsel %vm230_vm11, %v237_v50, %v239_v51  ;;  %v243_v59 = vsel %vm231_vm10, %v225_v46, %v242_v55  ;;  %v1356_v60 = vshrl.u32 %v155_v54, 30  ;;  %v236_v2 = vsel %vm230_vm11, %v233_v56, %v235_v57 }
  0xda   :  { %v244_v61 = vsel %vm230_vm11, %v241_v53, %v243_v59  ;;  %v1358_v62 = vmul.u32.u64.low %v245_v25, %v240_v58  ;;  %v1359_v63 = vmul.u32.u64.high %v245_v25, %v240_v58, %v1358_v62  ;;  %v252_v6 = vmul.u32 %v245_v25, %v236_v2 }
  0xdb   :  { %v1361_v0 = vmul.u32.u64.low %v245_v25, %v244_v61  ;;  %v1362_v1 = vmul.u32.u64.high %v245_v25, %v244_v61, %v1361_v0  ;;  %v157_v41 = vshll.u32 %v1356_v60, 30  ;;  %v150_v20 = vadd.s32 %v1345_v19, %v1342_v18 }
  0xdc   :  { %v255_v4 = vadd.s32 1, %v1359_v63  ;;  %v180_v54 = vsub.s32 4, %v1356_v60  ;;  %vm199_vm2 = vcmp.lt.s32.totalorder %v1322_v27, 0  ;;  %vm198_vm3 = vcmp.le.f32.partialorder %v197_v34, 0.7853982 }
  0xdd   :  { %v158_v3 = vsub.s32 %v154_v45, %v157_v41  ;;  %vm254_vm12 = vc.u32 %v1362_v1, %v1358_v62  ;;  %v253_v43 = vadd.s32 %v1358_v62, %v1362_v1 }
  0xde   :  { %v256_v8 = vsel %vm254_vm12, %v255_v4, %v1359_v63  ;;  %v181_v23 = vsel %vm96_vm15, %v180_v54, %v1356_v60 }
  0xdf   :  { %v160_v7 = vsub.s32 0, %v158_v3  ;;  %v257_v9 = vadd.s32 %v256_v8, %v252_v6  ;;  %v183_v61 = vsel %vm1376_vm1, 0, %v181_v23 }
  0xe0   :  { %v394_v1 = vadd.s32 3, %v183_v61  ;;  %v187_v4 = vand.u32 3, %v183_v61 }
  0xe1   :  { %v886_v10 = vmin.u32 %v160_v7, %v158_v3  ;;  %v258_v11 = vadd.s32 536870912, %v257_v9 }
  0xe2   :  { %vm189_vm6 = vcmp.eq.s32.totalorder %v187_v4, 0  ;;  %vm192_vm7 = vcmp.eq.s32.totalorder %v187_v4, 2  ;;  %vm188_vm9 = vcmp.lt.s32.totalorder %v187_v4, 2 }
  0xe3   :  { %v162_v12 = vclz %v886_v10  ;;  %v259_v13 = vshrl.u32 %v258_v11, 30 }
  0xe5   :  { %v887_v14 = vadd.s32 4294967294, %v162_v12  ;;  %v260_v15 = vshll.u32 %v259_v13, 30  ;;  %v283_v57 = vsub.s32 4, %v259_v13 }
  0xe7   :  { %vm888_vm13 = vcmp.lt.s32.totalorder %v887_v14, 0  ;;  %v261_v17 = vsub.s32 %v257_v9, %v260_v15  ;;  %v284_v62 = vsel %vm199_vm2, %v283_v57, %v259_v13 }
  0xe8   :  { %v165_v16 = vsel %vm888_vm13, 0, %v887_v14  ;;  %v286_v0 = vsel %vm198_vm3, 0, %v284_v62 }
  0xe9   :  { %v166_v21 = vsub.s32 32, %v165_v16  ;;  %v170_v24 = vsub.s32 4294967266, %v165_v16  ;;  %v263_v25 = vsub.s32 0, %v261_v17  ;;  %v167_v26 = vshll.u32 %v158_v3, %v165_v16 }
  0xea   :  { %v498_v60 = vadd.s32 3, %v286_v0  ;;  %v395_v3 = vand.u32 3, %v394_v1  ;;  %v290_v8 = vand.u32 3, %v286_v0 }
  0xeb   :  { %v168_v28 = vshrl.u32 %v150_v20, %v166_v21  ;;  %v171_v29 = vadd.s32 127, %v170_v24  ;;  %v890_v30 = vmin.u32 %v263_v25, %v261_v17 }
  0xec   :  { %v499_v34 = vand.u32 3, %v498_v60  ;;  %vm397_vm4 = vcmp.eq.s32.totalorder %v395_v3, 0  ;;  %vm400_vm5 = vcmp.eq.s32.totalorder %v395_v3, 2  ;;  %vm396_vm8 = vcmp.lt.s32.totalorder %v395_v3, 2 }
  0xed   :  { %v169_v31 = vor.u32 %v168_v28, %v167_v26  ;;  %v172_v32 = vshll.u32 %v171_v29, 23  ;;  %v265_v33 = vclz %v890_v30  ;;  %vm292_vm10 = vcmp.eq.s32.totalorder %v290_v8, 0 }
  0xee   :  { %vm501_vm11 = vcmp.eq.s32.totalorder %v499_v34, 0  ;;  %vm504_vm12 = vcmp.eq.s32.totalorder %v499_v34, 2  ;;  %vm295_vm13 = vcmp.eq.s32.totalorder %v290_v8, 2 }
  0xef   :  { %v173_v35 = vor.u32 4788187, %v172_v32  ;;  %v891_v36 = vadd.s32 4294967294, %v265_v33  ;;  %v176_v38 = vcvt.s32.f32 %v169_v31 }
  0xf1   :  { %v174_v37 = vand.u32 2147483647, %v173_v35  ;;  %vm892_vm14 = vcmp.lt.s32.totalorder %v891_v36, 0 }
  0xf2   :  { %v268_v42 = vsel %vm892_vm14, 0, %v891_v36  ;;  %vm500_vm14 = vcmp.lt.s32.totalorder %v499_v34, 2 }
  0xf3   :  { %v177_v40 = vmul.f32 %v176_v38, %v174_v37  ;;  %v269_v18 = vsub.s32 32, %v268_v42  ;;  %v273_v19 = vsub.s32 4294967266, %v268_v42  ;;  %v270_v39 = vshll.u32 %v261_v17, %v268_v42  ;;  %v1063_v37 = vld [vmem:[#allocation8] sm:$0xff]   ;;  %v1066_v38 = vld [vmem:[#allocation8 + $0x18] sm:$0xff]   ;;  %v1068_v42 = vld [vmem:[#allocation8 + $0x28] sm:$0xff]  }
  0xf5   :  { %v178_v44 = vxor.u32 2147483648, %v177_v40  ;;  %v271_v46 = vshrl.u32 %v253_v43, %v269_v18  ;;  %v274_v45 = vadd.s32 127, %v273_v19  ;;  %v1069_v43 = vld [vmem:[#allocation8 + $0x30] sm:$0xff]   ;;  %v1070_v18 = vld [vmem:[#allocation8 + $0x38] sm:$0xff]  }
  0xf7   :  { %v179_v47 = vsel %vm96_vm15, %v178_v44, %v177_v40  ;;  %v272_v49 = vor.u32 %v271_v46, %v270_v39  ;;  %v275_v50 = vshll.u32 %v274_v45, 23  ;;  %vm291_vm15 = vcmp.lt.s32.totalorder %v290_v8, 2  ;;  %v1067_v40 = vld [vmem:[#allocation8 + $0x20] sm:$0xff]  }
  0xf8   :  { %v182_v52 = vsel %vm1376_vm1, %v1318_v22, %v179_v47  ;;  %vm186_vm1 = vweird.f32 %v1318_v22  ;;  %v1064_v22 = vld [vmem:[#allocation8 + $0x8] sm:$0xff]   ;;  %v917_v39 = vld [vmem:[%s1429_s4] ss:$0 sm:$0xff] }
  0xf9   :  { %v276_v53 = vor.u32 4788187, %v275_v50  ;;  %1071 = vcosq.f32 %v182_v52  ;;  %v279_v55 = vcvt.s32.f32 %v272_v49 }
  0xfa   :  { %1073 = vsinq.f32 %v182_v52 }
  0xfb   :  { %v277_v51 = vand.u32 2147483647, %v276_v53 }
  0xfd   :  { %v280_v56 = vmul.f32 %v279_v55, %v277_v51 }
  0xff   :  { %v281_v58 = vxor.u32 2147483648, %v280_v56 }
 0x101   :  { %v282_v59 = vsel %vm199_vm2, %v281_v58, %v280_v56  ;;  %vm289_vm2 = vweird.f32 %v1322_v27 }
 0x102   :  { %v285_v63 = vsel %vm198_vm3, %v1322_v27, %v282_v59  ;;  %v1065_v27 = vld [vmem:[#allocation8 + $0x10] sm:$0xff]  }
 0x103   :  { %1075 = vcosq.f32 %v285_v63  ;;  %v1072_v41 = vpop.eup %1071 }
 0x104   :  { %1077 = vsinq.f32 %v285_v63  ;;  %v1074_v2 = vpop.eup %1073  ;;  %v193_v7 = vxor.u32 2147483648, %v1072_v41 }
 0x105   :  { %v190_v6 = vxor.u32 2147483648, %v1074_v2 }
 0x106   :  { %v402_v11 = vsel %vm400_vm5, %v193_v7, %v1074_v2  ;;  %v194_v13 = vsel %vm192_vm7, %v193_v7, %v1074_v2  ;;  %v918_v2 = vld [vmem:[%s1431_s6] ss:$0 sm:$0xff] }
 0x107   :  { %v399_v10 = vsel %vm397_vm4, %v1072_v41, %v190_v6  ;;  %v191_v12 = vsel %vm189_vm6, %v1072_v41, %v190_v6 }
 0x108   :  { %v403_v17 = vsel %vm396_vm8, %v399_v10, %v402_v11  ;;  %v195_v21 = vsel %vm188_vm9, %v191_v12, %v194_v13 }
 0x109   :  { %v404_v30 = vsel %vm186_vm1, nan, %v403_v17  ;;  %v196_v32 = vsel %vm186_vm1, nan, %v195_v21 }
 0x10d   :  { %v1076_v9 = vpop.eup %1075 }
 0x10e   :  { %v1078_v14 = vpop.eup %1077  ;;  %v296_v15 = vxor.u32 2147483648, %v1076_v9 }
 0x10f   :  { %v293_v16 = vxor.u32 2147483648, %v1078_v14 }
 0x110   :  { %v506_v20 = vsel %vm504_vm12, %v296_v15, %v1078_v14  ;;  %v297_v24 = vsel %vm295_vm13, %v296_v15, %v1078_v14 }
 0x111   :  { %v503_v25 = vsel %vm501_vm11, %v1076_v9, %v293_v16  ;;  %v294_v26 = vsel %vm292_vm10, %v1076_v9, %v293_v16 }
 0x112   :  { %v507_v28 = vsel %vm500_vm14, %v503_v25, %v506_v20  ;;  %v298_v29 = vsel %vm291_vm15, %v294_v26, %v297_v24 }
 0x113   :  { %v508_v31 = vsel %vm289_vm2, nan, %v507_v28  ;;  %v299_v33 = vsel %vm289_vm2, nan, %v298_v29 }
 0x114   :  { %v509_v35 = vpack.c.bf16 %v508_v31, %v404_v30  ;;  %v300_v36 = vpack.c.bf16 %v299_v33, %v196_v32 }
 0x116   :  { %980 = vmatmul.mubr.bf16.vlgmr.msra.gmra.mrb[0].mxu0 %v509_v35  ;;  %1000 = vmatmul.mubr.bf16.vlgmr.msra.gmra.mrb[0].mxu1 %v300_v36 }
 0x117   :  { %1019 = vmatprep.mubr.msk.bf16.mxu0 %vm1188_vm0, %v1187_v5  ;;  %1004 = vmatpush3.bf16.msra.mxu0 %v1063_v37 }
 0x118   :  { %1005 = vmatprep.subr.bf16.mxu0 %v1187_v5 }
 0x11b   :  { %1006 = vmatpush3.bf16.msra.mxu0 %v1064_v22 }
 0x11c   :  { %1007 = vmatprep.subr.bf16.mxu0 %v1187_v5 }
 0x11f   :  { %1008 = vmatpush3.bf16.msra.mxu0 %v1065_v27 }
 0x120   :  { %1009 = vmatprep.subr.bf16.mxu0 %v1187_v5 }
 0x123   :  { %1010 = vmatpush3.bf16.msra.mxu0 %v1066_v38 }
 0x124   :  { %1011 = vmatprep.subr.bf16.mxu0 %v1187_v5 }
 0x127   :  { %1012 = vmatpush3.bf16.msra.mxu0 %v1067_v40 }
 0x128   :  { %1013 = vmatprep.subr.bf16.mxu0 %v1187_v5 }
 0x12b   :  { %1014 = vmatpush3.bf16.msra.mxu0 %v1068_v42 }
 0x12c   :  { %1015 = vmatprep.subr.bf16.mxu0 %v1187_v5 }
 0x12f   :  { %1016 = vmatpush3.bf16.msra.mxu0 %v1069_v43 }
 0x130   :  { %1017 = vmatprep.subr.bf16.mxu0 %v1187_v5 }
 0x133   :  { %1018 = vmatpush3.bf16.msra.mxu0 %v1070_v18 }
 0x1e9   :  { %v624_v19 = vpop.f32.mrb[0].mxu0  ;;  %v713_v44 = vpop.f32.mrb[0].mxu1 }
 0x1ea   :  { %v714_v46 = vadd.f32 %v713_v44, %v624_v19  ;;  %v981_v45 = vpop.f32.mrb[1].mxu0  ;;  %v1001_v47 = vpop.f32.mrb[1].mxu1 }
 0x1eb   :  { %v627_v48 = vpop.f32.mrb[2].mxu0  ;;  %v716_v49 = vpop.f32.mrb[2].mxu1 }
 0x1ec   :  { %v727_v50 = vadd.f32 %v917_v39, %v714_v46  ;;  %v717_v52 = vadd.f32 %v716_v49, %v627_v48  ;;  %v982_v53 = vpop.f32.mrb[3].mxu0  ;;  %v1002_v54 = vpop.f32.mrb[3].mxu1 }
 0x1ee   :  { %v729_v51 = vsub.f32 0.0, %v727_v50  ;;  %v728_v55 = vadd.f32 %v917_v39, %v717_v52 }
 0x1f0   :  { %v731_v5 = vmul.f32 1.442695, %v729_v51  ;;  %v730_v56 = vsub.f32 0.0, %v728_v55 }
 0x1f2   :  { %1079 = vpow2.f32 %v731_v5  ;;  %v733_v57 = vmul.f32 1.442695, %v730_v56 }
 0x1f4   :  { %1081 = vpow2.f32 %v733_v57 }
 0x1fc   :  { %v1080_v23 = vpop.eup %1079 }
 0x1fd   :  { %v735_v58 = vadd.f32 1.0, %v1080_v23 }
 0x1fe   :  { %v1082_v59 = vpop.eup %1081 }
 0x1ff   :  { %1083 = vrcp.f32 %v735_v58  ;;  %v736_v61 = vadd.f32 1.0, %v1082_v59 }
 0x201   :  { %1085 = vrcp.f32 %v736_v61 }
 0x209   :  { %v1084_v62 = vpop.eup %1083 }
 0x20a   :  { %v739_v0 = vmul.f32 %v1084_v62, %v727_v50 }
 0x20b   :  { %v1086_v63 = vpop.eup %1085 }
 0x20c   :  { %v740_v1 = vmul.f32 %v1086_v63, %v728_v55 }
 0x20e   :  { %v741_v41 = vpack.c.bf16 %v740_v1, %v739_v0 }
 0x210   :  { %1020 = vmatmul.mubr.bf16.vlgmr.msra.gmra.mrb[4].mxu0 %v741_v41 }
 0x2e3   :  { %v849_v60 = vpop.f32.mrb[4].mxu0 }
 0x2e4   :  { %v1021_v3 = vpop.f32.mrb[5].mxu0  ;;  %v850_v6 = vadd.f32 %v918_v2, %v849_v60 }
 0x2e5   :  { %v852_v4 = vpop.f32.mrb[6].mxu0 }
 0x2e6   :  { %v853_v7 = vadd.f32 %v918_v2, %v852_v4  ;;  %v1022_v8 = vpop.f32.mrb[7].mxu0 }
 0x2e8   :  { %v934_v34 = vpack.c.bf16 %v853_v7, %v850_v6 }
 0x2ea   :  { %935 = vst [vmem:[#allocation9] sm:$0xff] %v934_v34  }
 0x2eb   :  { %1164 = shalt.err (!%p1161_p0)
}
 0x2ec   :  { %s1165_s25 = scalar_lea.hbm %s1432_s7, 128 }
 0x2ed   :  { %p1166_p1 = scmp.ne.s32.totalorder %s1432_s7, %s1165_s25  ;;  %p1169_p2 = scmp.lt.u32.totalorder %s1165_s25, %s1432_s7 }
 0x2ef   :  { %p1171_p3 = pnand %p1169_p2, %p1166_p1 }
 0x2f1   :  { %1174 = shalt.err (!%p1171_p3)
}
 0x2f2   :  { %877 = dma.vmem_to_hbm [thread:$0]  %s872_s23, 128, %s1432_s7, [#allocation5], %s1183_s13, %s1183_s13, %s1184_s14  }
 0x2f3   :  { %1179 = dma.done.wait [#allocation5], 128  }
 0x2f4   :  { %1180 = vsyncadd [#allocation5], 4294967168 }
 0x2f5   :  { %881 = vsyncpa [#allocation4], 1 }
 0x2f6   :  { %882 = vsyncpa [#allocation7], 1 }
 0x2f7   :  { %883 = vsyncpa [#allocation5], 1 }

// kernel: tpu_custom_call.1
= control target key start
LH: loop header
LB: loop body
LE: loop exit
PB: predicated region body
PF: predicated region fallthrough
CT: control target
= control target key end

     0   :  { %12 = vsyncpa [#allocation4], 0  ;;  %s1425_s0 = inlined_call_operand.vmem [shape: f32[16,1], index: 0, kind: input, shape index: {}]   ;;  %s1426_s1 = inlined_call_operand.vmem [shape: f32[1,128], index: 1, kind: input, shape index: {}]   ;;  %s1427_s2 = inlined_call_operand.hbm [shape: bf16[128,128], index: 2, kind: input, shape index: {}]   ;;  %s1428_s3 = inlined_call_operand.hbm [shape: bf16[128,128], index: 3, kind: input, shape index: {}]   ;;  %s1429_s4 = inlined_call_operand.vmem [shape: f32[1,128], index: 4, kind: input, shape index: {}]   ;;  %s1430_s5 = inlined_call_operand.hbm [shape: bf16[128,128], index: 5, kind: input, shape index: {}]   ;;  %s1431_s6 = inlined_call_operand.vmem [shape: f32[1,128], index: 6, kind: input, shape index: {}]   ;;  %s1432_s7 = inlined_call_operand.hbm [shape: bf16[16,128], index: 7, kind: output, shape index: {}]  }
   0x1   :  { %13 = vsyncpa [#allocation7], 0 }
   0x2   :  { %14 = vsyncpa [#allocation5], 0  ;;  %s1181_s24 = smov [#allocation6]   ;;  %s1182_s26 = smov [#allocation3]  }
   0x3   :  { %s36_s25 = sshll.u32 %s1181_s24, 4  ;;  %s24_s27 = sshll.u32 %s1182_s26, 4  ;;  %s37_s25 = int_to_ptr.vmem [resolvable:$true] %s36_s25  ;;  %s1236_s27 = int_to_ptr.vmem [resolvable:$true] %s24_s27 }
   0x4   :  { %s1087_s30 = scalar_lea.hbm %s1428_s3, 1024 }
   0x5   :  { %p1088_p0 = scmp.ne.s32.totalorder %s1428_s3, %s1087_s30  ;;  %p1091_p1 = scmp.lt.u32.totalorder %s1087_s30, %s1428_s3 }
   0x7   :  { %p1093_p2 = pnand %p1091_p1, %p1088_p0 }
   0x9   :  { %1096 = shalt.err (!%p1093_p2)
}
   0xa   :  { %s1097_s12 = scalar_lea.vmem %s37_s25, 1024  ;;  %p1102_p4 = scmp.lt.s32.totalorder %s37_s25, %s37_s25 }
   0xb   :  { %p1098_p3 = scmp.ne.s32.totalorder %s37_s25, %s1097_s12  ;;  %p1103_p5 = scmp.lt.s32.totalorder %s1097_s12, %s1097_s12 }
   0xd   :  { %p1104_p6 = por %p1103_p5, %p1102_p4 }
   0xf   :  { %p1105_p7 = pnand %p1104_p6, %p1098_p3 }
  0x11   :  { %1108 = shalt.err (!%p1105_p7)
}
  0x12   :  { %s1183_s13 = smov 64   ;;  %s1184_s14 = smov 4  }
  0x13   :  { %42 = dma.hbm_to_vmem [thread:$0]  %s1428_s3, 1024, %s37_s25, [#allocation7], %s1183_s13, %s1183_s13, %s1184_s14  }
  0x14   :  { %s1109_s19 = scalar_lea.hbm %s1427_s2, 1024 }
  0x15   :  { %p1110_p8 = scmp.ne.s32.totalorder %s1427_s2, %s1109_s19  ;;  %p1113_p9 = scmp.lt.u32.totalorder %s1109_s19, %s1427_s2 }
  0x17   :  { %p1115_p10 = pnand %p1113_p9, %p1110_p8 }
  0x19   :  { %1118 = shalt.err (!%p1115_p10)
}
  0x1a   :  { %s1119_s24 = scalar_lea.vmem %s1236_s27, 1024  ;;  %p1124_p12 = scmp.lt.s32.totalorder %s1236_s27, %s1236_s27 }
  0x1b   :  { %p1120_p11 = scmp.ne.s32.totalorder %s1236_s27, %s1119_s24  ;;  %p1125_p13 = scmp.lt.s32.totalorder %s1119_s24, %s1119_s24 }
  0x1d   :  { %p1126_p0 = por %p1125_p13, %p1124_p12 }
  0x1f   :  { %p1127_p1 = pnand %p1126_p0, %p1120_p11 }
  0x21   :  { %1130 = shalt.err (!%p1127_p1)
}
  0x22   :  { %30 = dma.hbm_to_vmem [thread:$0]  %s1427_s2, 1024, %s1236_s27, [#allocation4], %s1183_s13, %s1183_s13, %s1184_s14  }
  0x23   :  { %s1185_s26 = smov [#allocation8]   ;;  %s1131_s8 = scalar_lea.hbm %s1430_s5, 1024 }
  0x24   :  { %s50_s28 = sshll.u32 %s1185_s26, 4  ;;  %p1132_p2 = scmp.ne.s32.totalorder %s1430_s5, %s1131_s8  ;;  %s51_s28 = int_to_ptr.vmem [resolvable:$true] %s50_s28 }
  0x25   :  { %p1135_p3 = scmp.lt.u32.totalorder %s1131_s8, %s1430_s5 }
  0x27   :  { %p1137_p4 = pnand %p1135_p3, %p1132_p2 }
  0x29   :  { %1140 = shalt.err (!%p1137_p4)
}
  0x2a   :  { %s1141_s15 = scalar_lea.vmem %s51_s28, 1024  ;;  %p1146_p6 = scmp.lt.s32.totalorder %s51_s28, %s51_s28 }
  0x2b   :  { %p1142_p5 = scmp.ne.s32.totalorder %s51_s28, %s1141_s15  ;;  %p1147_p7 = scmp.lt.s32.totalorder %s1141_s15, %s1141_s15 }
  0x2d   :  { %p1148_p8 = por %p1147_p7, %p1146_p6 }
  0x2f   :  { %p1149_p9 = pnand %p1148_p8, %p1142_p5 }
  0x31   :  { %1152 = shalt.err (!%p1149_p9)
}
  0x32   :  { %56 = dma.hbm_to_vmem [thread:$0]  %s1430_s5, 1024, %s51_s28, [#allocation7], %s1183_s13, %s1183_s13, %s1184_s14  }
  0x33   :  { %1175 = dma.done.wait [#allocation4], 1024  }
  0x34   :  { %1176 = vsyncadd [#allocation4], 4294966272 }
  0x35   :  { %1177 = dma.done.wait [#allocation7], 2048  }
  0x36   :  { %1178 = vsyncadd [#allocation7], 4294965248  ;;  %v1186_v0 = vmov 0   ;;  %v73_v1 = vld [vmem:[%s1425_s0] sm:$0xff]  ;;  %v74_v2 = vld [vmem:[%s1425_s0 + $0x8] sm:$0xff]  ;;  %v1187_v5 = vmov 0.0  }
  0x37   :  { %1046 = vset.pattern.permute.xlu0 %v1186_v0  ;;  %v1047_v3 = vld [vmem:[#allocation6] sm:$0xff]   ;;  %963 = vmatprep.subr.bf16.mxu0 %v1187_v5  ;;  %v1049_v6 = vld [vmem:[#allocation6 + $0x8] sm:$0xff]   ;;  %v1051_v8 = vld [vmem:[#allocation6 + $0x10] sm:$0xff]   ;;  %vm1188_vm0 = vmmov 0   ;;  %v1189_v41 = vmov 683565275  }
  0x38   :  { %78 = vperm.xlu0 %1046, %v73_v1   ;;  %v1048_v4 = vld [vmem:[#allocation3] sm:$0xff]   ;;  %983 = vmatprep.subr.bf16.mxu1 %v1187_v5  ;;  %v1050_v7 = vld [vmem:[#allocation3 + $0x8] sm:$0xff]   ;;  %v1052_v9 = vld [vmem:[#allocation3 + $0x10] sm:$0xff]   ;;  %v1190_v45 = vmov 2475754826   ;;  %s1195_s22 = smov [#allocation9]  }
  0x39   :  { %964 = vmatpush3.bf16.msra.mxu0 %v1047_v3  ;;  %984 = vmatpush3.bf16.msra.mxu1 %v1048_v4  ;;  %v1053_v10 = vld [vmem:[#allocation6 + $0x18] sm:$0xff]   ;;  %v1055_v12 = vld [vmem:[#allocation6 + $0x20] sm:$0xff]   ;;  %v1057_v14 = vld [vmem:[#allocation6 + $0x28] sm:$0xff]   ;;  %v1191_v47 = vmov 2131351028   ;;  %s871_s23 = sshll.u32 %s1195_s22, 4  ;;  %s872_s23 = int_to_ptr.vmem [resolvable:$true] %s871_s23 }
  0x3a   :  { %965 = vmatprep.subr.bf16.mxu0 %v1187_v5  ;;  %985 = vmatprep.subr.bf16.mxu1 %v1187_v5  ;;  %v1054_v11 = vld [vmem:[#allocation3 + $0x18] sm:$0xff]   ;;  %v1056_v13 = vld [vmem:[#allocation3 + $0x20] sm:$0xff]   ;;  %v1058_v15 = vld [vmem:[#allocation3 + $0x28] sm:$0xff]   ;;  %v1192_v49 = vmov 2102212464   ;;  %s1153_s24 = scalar_lea.vmem %s872_s23, 128  ;;  %p1158_p11 = scmp.lt.s32.totalorder %s872_s23, %s872_s23 }
  0x3b   :  { %979 = vmatprep.mubr.msk.bf16.mxu0 %vm1188_vm0, %v1187_v5  ;;  %999 = vmatprep.mubr.msk.bf16.mxu1 %vm1188_vm0, %v1187_v5  ;;  %v1059_v16 = vld [vmem:[#allocation6 + $0x30] sm:$0xff]   ;;  %v1061_v18 = vld [vmem:[#allocation6 + $0x38] sm:$0xff]   ;;  %v884_v20 = vld [vmem:[%s1426_s1] ss:$0 sm:$0xff]  ;;  %v1193_v51 = vmov 920167782   ;;  %p1154_p10 = scmp.ne.s32.totalorder %s872_s23, %s1153_s24  ;;  %p1159_p12 = scmp.lt.s32.totalorder %s1153_s24, %s1153_s24 }
  0x3c   :  { %83 = vperm.xlu0 %1046, %v74_v2   ;;  %v1060_v17 = vld [vmem:[#allocation3 + $0x30] sm:$0xff]   ;;  %v1062_v19 = vld [vmem:[#allocation3 + $0x38] sm:$0xff]   ;;  %v1194_v58 = vmov 1326507024  }
  0x3d   :  { %966 = vmatpush3.bf16.msra.mxu0 %v1049_v6  ;;  %986 = vmatpush3.bf16.msra.mxu1 %v1050_v7  ;;  %p1160_p13 = por %p1159_p12, %p1158_p11 }
  0x3e   :  { %967 = vmatprep.subr.bf16.mxu0 %v1187_v5  ;;  %987 = vmatprep.subr.bf16.mxu1 %v1187_v5 }
  0x3f   :  { %p1161_p0 = pnand %p1160_p13, %p1154_p10 }
  0x41   :  { %968 = vmatpush3.bf16.msra.mxu0 %v1051_v8  ;;  %988 = vmatpush3.bf16.msra.mxu1 %v1052_v9 }
  0x42   :  { %969 = vmatprep.subr.bf16.mxu0 %v1187_v5  ;;  %989 = vmatprep.subr.bf16.mxu1 %v1187_v5 }
  0x45   :  { %970 = vmatpush3.bf16.msra.mxu0 %v1053_v10  ;;  %990 = vmatpush3.bf16.msra.mxu1 %v1054_v11 }
  0x46   :  { %971 = vmatprep.subr.bf16.mxu0 %v1187_v5  ;;  %991 = vmatprep.subr.bf16.mxu1 %v1187_v5 }
  0x49   :  { %972 = vmatpush3.bf16.msra.mxu0 %v1055_v12  ;;  %992 = vmatpush3.bf16.msra.mxu1 %v1056_v13 }
  0x4a   :  { %973 = vmatprep.subr.bf16.mxu0 %v1187_v5  ;;  %993 = vmatprep.subr.bf16.mxu1 %v1187_v5 }
  0x4d   :  { %974 = vmatpush3.bf16.msra.mxu0 %v1057_v14  ;;  %994 = vmatpush3.bf16.msra.mxu1 %v1058_v15 }
  0x4e   :  { %975 = vmatprep.subr.bf16.mxu0 %v1187_v5  ;;  %995 = vmatprep.subr.bf16.mxu1 %v1187_v5 }
  0x51   :  { %976 = vmatpush3.bf16.msra.mxu0 %v1059_v16  ;;  %996 = vmatpush3.bf16.msra.mxu1 %v1060_v17 }
  0x52   :  { %977 = vmatprep.subr.bf16.mxu0 %v1187_v5  ;;  %997 = vmatprep.subr.bf16.mxu1 %v1187_v5 }
  0x55   :  { %978 = vmatpush3.bf16.msra.mxu0 %v1061_v18  ;;  %998 = vmatpush3.bf16.msra.mxu1 %v1062_v19 }
  0x56   :  { %1003 = vmatprep.subr.bf16.mxu0 %v1187_v5 }
  0xb7   :  { %v79_v21 = vpop.permute.xlu0 %78 }
  0xb8   :  { %v1318_v22 = vmul.f32 %v884_v20, %v79_v21 }
  0xba   :  { %v94_v23 = vand.u32 2147483647, %v1318_v22  ;;  %v97_v24 = vand.u32 2139095040, %v1318_v22  ;;  %vm96_vm15 = vcmp.lt.s32.totalorder %v1318_v22, 0 }
  0xbb   :  { %v84_v25 = vpop.permute.xlu0 %83 }
  0xbc   :  { %v98_v26 = vshrl.u32 %v97_v24, 23  ;;  %v1322_v27 = vmul.f32 %v884_v20, %v84_v25  ;;  %v101_v28 = vand.u32 8388607, %v94_v23 }
  0xbe   :  { %v885_v29 = vadd.s32 4294967169, %v98_v26  ;;  %v200_v30 = vand.u32 2139095040, %v1322_v27  ;;  %v102_v32 = vor.u32 8388608, %v101_v28  ;;  %v197_v34 = vand.u32 2147483647, %v1322_v27 }
  0xc0   :  { %v104_v31 = vadd.s32 1, %v885_v29  ;;  %v201_v33 = vshrl.u32 %v200_v30, 23  ;;  %v1328_v39 = vshll.u32 %v102_v32, 8  ;;  %v204_v43 = vand.u32 8388607, %v197_v34 }
  0xc2   :  { %vm105_vm1 = vcmp.gt.s32.totalorder %v104_v31, 0  ;;  %v889_v36 = vadd.s32 4294967169, %v201_v33  ;;  %v205_v10 = vor.u32 8388608, %v204_v43 }
  0xc3   :  { %v106_v35 = vsel %vm105_vm1, %v104_v31, 0  ;;  %vm1376_vm1 = vcmp.le.f32.partialorder %v94_v23, 0.7853982 }
  0xc4   :  { %v107_v37 = vshrl.u32 %v106_v35, 5  ;;  %v108_v38 = vand.u32 31, %v106_v35  ;;  %v207_v44 = vadd.s32 1, %v889_v36  ;;  %v245_v25 = vshll.u32 %v205_v10, 8 }
  0xc6   :  { %v109_v40 = vsub.s32 32, %v108_v38  ;;  %v111_v42 = vshll.u32 %v1189_v41, %v108_v38  ;;  %v114_v46 = vshll.u32 %v1190_v45, %v108_v38  ;;  %v117_v48 = vshll.u32 %v1191_v47, %v108_v38 }
  0xc7   :  { %v120_v50 = vshll.u32 %v1192_v49, %v108_v38  ;;  %v123_v52 = vshll.u32 %v1193_v51, %v108_v38  ;;  %vm126_vm2 = vcmp.lt.s32.totalorder %v107_v37, 1  ;;  %vm128_vm3 = vcmp.lt.s32.totalorder %v107_v37, 3 }
  0xc8   :  { %v112_v53 = vshrl.u32 %v1190_v45, %v109_v40  ;;  %v115_v54 = vshrl.u32 %v1191_v47, %v109_v40  ;;  %v118_v55 = vshrl.u32 %v1192_v49, %v109_v40  ;;  %v110_v56 = vshrl.u32 %v1189_v41, %v109_v40 }
  0xc9   :  { %v121_v57 = vshrl.u32 %v1193_v51, %v109_v40  ;;  %v124_v59 = vshrl.u32 %v1194_v58, %v109_v40  ;;  %vm208_vm4 = vcmp.gt.s32.totalorder %v207_v44, 0  ;;  %vm129_vm5 = vcmp.lt.s32.totalorder %v107_v37, 4 }
  0xca   :  { %v113_v60 = vor.u32 %v112_v53, %v111_v42  ;;  %v116_v61 = vor.u32 %v115_v54, %v114_v46  ;;  %v119_v62 = vor.u32 %v118_v55, %v117_v48  ;;  %v209_v1 = vsel %vm208_vm4, %v207_v44, 0 }
  0xcb   :  { %v122_v63 = vor.u32 %v121_v57, %v120_v50  ;;  %v125_v0 = vor.u32 %v124_v59, %v123_v52  ;;  %vm127_vm6 = vcmp.lt.s32.totalorder %v107_v37, 2  ;;  %v211_v13 = vand.u32 31, %v209_v1 }
  0xcc   :  { %v130_v2 = vsel %vm126_vm2, %v110_v56, %v113_v60  ;;  %v131_v3 = vsel %vm129_vm5, %v119_v62, 2102212464  ;;  %v134_v4 = vsel %vm126_vm2, %v113_v60, %v116_v61  ;;  %v138_v6 = vsel %vm126_vm2, %v116_v61, %v119_v62 }
  0xcd   :  { %v132_v7 = vsel %vm128_vm3, %v116_v61, %v131_v3  ;;  %v135_v8 = vsel %vm129_vm5, %v122_v63, 920167782  ;;  %v139_v9 = vsel %vm129_vm5, %v125_v0, 1326507024  ;;  %v210_v21 = vshrl.u32 %v209_v1, 5 }
  0xce   :  { %v136_v11 = vsel %vm128_vm3, %v119_v62, %v135_v8  ;;  %v140_v12 = vsel %vm128_vm3, %v122_v63, %v139_v9  ;;  %v133_v14 = vsel %vm127_vm6, %v130_v2, %v132_v7  ;;  %v212_v24 = vsub.s32 32, %v211_v13 }
  0xcf   :  { %v137_v15 = vsel %vm127_vm6, %v134_v4, %v136_v11  ;;  %v141_v16 = vsel %vm127_vm6, %v138_v6, %v140_v12  ;;  %v149_v26 = vmul.u32 %v1328_v39, %v133_v14  ;;  %v214_v28 = vshll.u32 %v1189_v41, %v211_v13 }
  0xd0   :  { %v1341_v17 = vmul.u32.u64.low %v1328_v39, %v141_v16  ;;  %v1342_v18 = vmul.u32.u64.high %v1328_v39, %v141_v16, %v1341_v17  ;;  %v1345_v19 = vmul.u32.u64.low %v1328_v39, %v137_v15  ;;  %v1346_v20 = vmul.u32.u64.high %v1328_v39, %v137_v15, %v1345_v19 }
  0xd1   :  { %v217_v29 = vshll.u32 %v1190_v45, %v211_v13  ;;  %v220_v30 = vshll.u32 %v1191_v47, %v211_v13  ;;  %v215_v31 = vshrl.u32 %v1190_v45, %v212_v24  ;;  %v218_v32 = vshrl.u32 %v1191_v47, %v212_v24 }
  0xd2   :  { %v221_v33 = vshrl.u32 %v1192_v49, %v212_v24  ;;  %v223_v35 = vshll.u32 %v1192_v49, %v211_v13  ;;  %vm151_vm7 = vc.u32 %v1342_v18, %v1345_v19  ;;  %v152_v36 = vadd.s32 1, %v1346_v20 }
  0xd3   :  { %v224_v37 = vshrl.u32 %v1193_v51, %v212_v24  ;;  %v226_v38 = vshll.u32 %v1193_v51, %v211_v13  ;;  %v216_v40 = vor.u32 %v215_v31, %v214_v28  ;;  %v219_v42 = vor.u32 %v218_v32, %v217_v29 }
  0xd4   :  { %v222_v43 = vor.u32 %v221_v33, %v220_v30  ;;  %v227_v44 = vshrl.u32 %v1194_v58, %v212_v24  ;;  %v153_v39 = vsel %vm151_vm7, %v152_v36, %v1346_v20  ;;  %vm229_vm8 = vcmp.lt.s32.totalorder %v210_v21, 1 }
  0xd5   :  { %v225_v46 = vor.u32 %v224_v37, %v223_v35  ;;  %vm232_vm9 = vcmp.lt.s32.totalorder %v210_v21, 4  ;;  %v154_v45 = vadd.s32 %v153_v39, %v149_v26  ;;  %vm231_vm10 = vcmp.lt.s32.totalorder %v210_v21, 3 }
  0xd6   :  { %v228_v47 = vor.u32 %v227_v44, %v226_v38  ;;  %v234_v48 = vsel %vm232_vm9, %v222_v43, 2102212464  ;;  %v213_v49 = vshrl.u32 %v1189_v41, %v212_v24  ;;  %v237_v50 = vsel %vm229_vm8, %v216_v40, %v219_v42 }
  0xd7   :  { %v238_v52 = vsel %vm232_vm9, %v225_v46, 920167782  ;;  %v241_v53 = vsel %vm229_vm8, %v219_v42, %v222_v43  ;;  %v155_v54 = vadd.s32 536870912, %v154_v45  ;;  %vm230_vm11 = vcmp.lt.s32.totalorder %v210_v21, 2 }
  0xd8   :  { %v239_v51 = vsel %vm231_vm10, %v222_v43, %v238_v52  ;;  %v242_v55 = vsel %vm232_vm9, %v228_v47, 1326507024  ;;  %v233_v56 = vsel %vm229_vm8, %v213_v49, %v216_v40  ;;  %v235_v57 = vsel %vm231_vm10, %v219_v42, %v234_v48 }
  0xd9   :  { %v240_v58 = vsel %vm230_vm11, %v237_v50, %v239_v51  ;;  %v243_v59 = vsel %vm231_vm10, %v225_v46, %v242_v55  ;;  %v1356_v60 = vshrl.u32 %v155_v54, 30  ;;  %v236_v2 = vsel %vm230_vm11, %v233_v56, %v235_v57 }
  0xda   :  { %v244_v61 = vsel %vm230_vm11, %v241_v53, %v243_v59  ;;  %v1358_v62 = vmul.u32.u64.low %v245_v25, %v240_v58  ;;  %v1359_v63 = vmul.u32.u64.high %v245_v25, %v240_v58, %v1358_v62  ;;  %v252_v6 = vmul.u32 %v245_v25, %v236_v2 }
  0xdb   :  { %v1361_v0 = vmul.u32.u64.low %v245_v25, %v244_v61  ;;  %v1362_v1 = vmul.u32.u64.high %v245_v25, %v244_v61, %v1361_v0  ;;  %v157_v41 = vshll.u32 %v1356_v60, 30  ;;  %v150_v20 = vadd.s32 %v1345_v19, %v1342_v18 }
  0xdc   :  { %v255_v4 = vadd.s32 1, %v1359_v63  ;;  %v180_v54 = vsub.s32 4, %v1356_v60  ;;  %vm199_vm2 = vcmp.lt.s32.totalorder %v1322_v27, 0  ;;  %vm198_vm3 = vcmp.le.f32.partialorder %v197_v34, 0.7853982 }
  0xdd   :  { %v158_v3 = vsub.s32 %v154_v45, %v157_v41  ;;  %vm254_vm12 = vc.u32 %v1362_v1, %v1358_v62  ;;  %v253_v43 = vadd.s32 %v1358_v62, %v1362_v1 }
  0xde   :  { %v256_v8 = vsel %vm254_vm12, %v255_v4, %v1359_v63  ;;  %v181_v23 = vsel %vm96_vm15, %v180_v54, %v1356_v60 }
  0xdf   :  { %v160_v7 = vsub.s32 0, %v158_v3  ;;  %v257_v9 = vadd.s32 %v256_v8, %v252_v6  ;;  %v183_v61 = vsel %vm1376_vm1, 0, %v181_v23 }
  0xe0   :  { %v394_v1 = vadd.s32 3, %v183_v61  ;;  %v187_v4 = vand.u32 3, %v183_v61 }
  0xe1   :  { %v886_v10 = vmin.u32 %v160_v7, %v158_v3  ;;  %v258_v11 = vadd.s32 536870912, %v257_v9 }
  0xe2   :  { %vm189_vm6 = vcmp.eq.s32.totalorder %v187_v4, 0  ;;  %vm192_vm7 = vcmp.eq.s32.totalorder %v187_v4, 2  ;;  %vm188_vm9 = vcmp.lt.s32.totalorder %v187_v4, 2 }
  0xe3   :  { %v162_v12 = vclz %v886_v10  ;;  %v259_v13 = vshrl.u32 %v258_v11, 30 }
  0xe5   :  { %v887_v14 = vadd.s32 4294967294, %v162_v12  ;;  %v260_v15 = vshll.u32 %v259_v13, 30  ;;  %v283_v57 = vsub.s32 4, %v259_v13 }
  0xe7   :  { %vm888_vm13 = vcmp.lt.s32.totalorder %v887_v14, 0  ;;  %v261_v17 = vsub.s32 %v257_v9, %v260_v15  ;;  %v284_v62 = vsel %vm199_vm2, %v283_v57, %v259_v13 }
  0xe8   :  { %v165_v16 = vsel %vm888_vm13, 0, %v887_v14  ;;  %v286_v0 = vsel %vm198_vm3, 0, %v284_v62 }
  0xe9   :  { %v166_v21 = vsub.s32 32, %v165_v16  ;;  %v170_v24 = vsub.s32 4294967266, %v165_v16  ;;  %v263_v25 = vsub.s32 0, %v261_v17  ;;  %v167_v26 = vshll.u32 %v158_v3, %v165_v16 }
  0xea   :  { %v498_v60 = vadd.s32 3, %v286_v0  ;;  %v395_v3 = vand.u32 3, %v394_v1  ;;  %v290_v8 = vand.u32 3, %v286_v0 }
  0xeb   :  { %v168_v28 = vshrl.u32 %v150_v20, %v166_v21  ;;  %v171_v29 = vadd.s32 127, %v170_v24  ;;  %v890_v30 = vmin.u32 %v263_v25, %v261_v17 }
  0xec   :  { %v499_v34 = vand.u32 3, %v498_v60  ;;  %vm397_vm4 = vcmp.eq.s32.totalorder %v395_v3, 0  ;;  %vm400_vm5 = vcmp.eq.s32.totalorder %v395_v3, 2  ;;  %vm396_vm8 = vcmp.lt.s32.totalorder %v395_v3, 2 }
  0xed   :  { %v169_v31 = vor.u32 %v168_v28, %v167_v26  ;;  %v172_v32 = vshll.u32 %v171_v29, 23  ;;  %v265_v33 = vclz %v890_v30  ;;  %vm292_vm10 = vcmp.eq.s32.totalorder %v290_v8, 0 }
  0xee   :  { %vm501_vm11 = vcmp.eq.s32.totalorder %v499_v34, 0  ;;  %vm504_vm12 = vcmp.eq.s32.totalorder %v499_v34, 2  ;;  %vm295_vm13 = vcmp.eq.s32.totalorder %v290_v8, 2 }
  0xef   :  { %v173_v35 = vor.u32 4788187, %v172_v32  ;;  %v891_v36 = vadd.s32 4294967294, %v265_v33  ;;  %v176_v38 = vcvt.s32.f32 %v169_v31 }
  0xf1   :  { %v174_v37 = vand.u32 2147483647, %v173_v35  ;;  %vm892_vm14 = vcmp.lt.s32.totalorder %v891_v36, 0 }
  0xf2   :  { %v268_v42 = vsel %vm892_vm14, 0, %v891_v36  ;;  %vm500_vm14 = vcmp.lt.s32.totalorder %v499_v34, 2 }
  0xf3   :  { %v177_v40 = vmul.f32 %v176_v38, %v174_v37  ;;  %v269_v18 = vsub.s32 32, %v268_v42  ;;  %v273_v19 = vsub.s32 4294967266, %v268_v42  ;;  %v270_v39 = vshll.u32 %v261_v17, %v268_v42  ;;  %v1063_v37 = vld [vmem:[#allocation8] sm:$0xff]   ;;  %v1066_v38 = vld [vmem:[#allocation8 + $0x18] sm:$0xff]   ;;  %v1068_v42 = vld [vmem:[#allocation8 + $0x28] sm:$0xff]  }
  0xf5   :  { %v178_v44 = vxor.u32 2147483648, %v177_v40  ;;  %v271_v46 = vshrl.u32 %v253_v43, %v269_v18  ;;  %v274_v45 = vadd.s32 127, %v273_v19  ;;  %v1069_v43 = vld [vmem:[#allocation8 + $0x30] sm:$0xff]   ;;  %v1070_v18 = vld [vmem:[#allocation8 + $0x38] sm:$0xff]  }
  0xf7   :  { %v179_v47 = vsel %vm96_vm15, %v178_v44, %v177_v40  ;;  %v272_v49 = vor.u32 %v271_v46, %v270_v39  ;;  %v275_v50 = vshll.u32 %v274_v45, 23  ;;  %vm291_vm15 = vcmp.lt.s32.totalorder %v290_v8, 2  ;;  %v1067_v40 = vld [vmem:[#allocation8 + $0x20] sm:$0xff]  }
  0xf8   :  { %v182_v52 = vsel %vm1376_vm1, %v1318_v22, %v179_v47  ;;  %vm186_vm1 = vweird.f32 %v1318_v22  ;;  %v1064_v22 = vld [vmem:[#allocation8 + $0x8] sm:$0xff]   ;;  %v917_v39 = vld [vmem:[%s1429_s4] ss:$0 sm:$0xff] }
  0xf9   :  { %v276_v53 = vor.u32 4788187, %v275_v50  ;;  %1071 = vcosq.f32 %v182_v52  ;;  %v279_v55 = vcvt.s32.f32 %v272_v49 }
  0xfa   :  { %1073 = vsinq.f32 %v182_v52 }
  0xfb   :  { %v277_v51 = vand.u32 2147483647, %v276_v53 }
  0xfd   :  { %v280_v56 = vmul.f32 %v279_v55, %v277_v51 }
  0xff   :  { %v281_v58 = vxor.u32 2147483648, %v280_v56 }
 0x101   :  { %v282_v59 = vsel %vm199_vm2, %v281_v58, %v280_v56  ;;  %vm289_vm2 = vweird.f32 %v1322_v27 }
 0x102   :  { %v285_v63 = vsel %vm198_vm3, %v1322_v27, %v282_v59  ;;  %v1065_v27 = vld [vmem:[#allocation8 + $0x10] sm:$0xff]  }
 0x103   :  { %1075 = vcosq.f32 %v285_v63  ;;  %v1072_v41 = vpop.eup %1071 }
 0x104   :  { %1077 = vsinq.f32 %v285_v63  ;;  %v1074_v2 = vpop.eup %1073  ;;  %v193_v7 = vxor.u32 2147483648, %v1072_v41 }
 0x105   :  { %v190_v6 = vxor.u32 2147483648, %v1074_v2 }
 0x106   :  { %v402_v11 = vsel %vm400_vm5, %v193_v7, %v1074_v2  ;;  %v194_v13 = vsel %vm192_vm7, %v193_v7, %v1074_v2  ;;  %v918_v2 = vld [vmem:[%s1431_s6] ss:$0 sm:$0xff] }
 0x107   :  { %v399_v10 = vsel %vm397_vm4, %v1072_v41, %v190_v6  ;;  %v191_v12 = vsel %vm189_vm6, %v1072_v41, %v190_v6 }
 0x108   :  { %v403_v17 = vsel %vm396_vm8, %v399_v10, %v402_v11  ;;  %v195_v21 = vsel %vm188_vm9, %v191_v12, %v194_v13 }
 0x109   :  { %v404_v30 = vsel %vm186_vm1, nan, %v403_v17  ;;  %v196_v32 = vsel %vm186_vm1, nan, %v195_v21 }
 0x10d   :  { %v1076_v9 = vpop.eup %1075 }
 0x10e   :  { %v1078_v14 = vpop.eup %1077  ;;  %v296_v15 = vxor.u32 2147483648, %v1076_v9 }
 0x10f   :  { %v293_v16 = vxor.u32 2147483648, %v1078_v14 }
 0x110   :  { %v506_v20 = vsel %vm504_vm12, %v296_v15, %v1078_v14  ;;  %v297_v24 = vsel %vm295_vm13, %v296_v15, %v1078_v14 }
 0x111   :  { %v503_v25 = vsel %vm501_vm11, %v1076_v9, %v293_v16  ;;  %v294_v26 = vsel %vm292_vm10, %v1076_v9, %v293_v16 }
 0x112   :  { %v507_v28 = vsel %vm500_vm14, %v503_v25, %v506_v20  ;;  %v298_v29 = vsel %vm291_vm15, %v294_v26, %v297_v24 }
 0x113   :  { %v508_v31 = vsel %vm289_vm2, nan, %v507_v28  ;;  %v299_v33 = vsel %vm289_vm2, nan, %v298_v29 }
 0x114   :  { %v509_v35 = vpack.c.bf16 %v508_v31, %v404_v30  ;;  %v300_v36 = vpack.c.bf16 %v299_v33, %v196_v32 }
 0x116   :  { %980 = vmatmul.mubr.bf16.vlgmr.msra.gmra.mrb[0].mxu0 %v509_v35  ;;  %1000 = vmatmul.mubr.bf16.vlgmr.msra.gmra.mrb[0].mxu1 %v300_v36 }
 0x117   :  { %1019 = vmatprep.mubr.msk.bf16.mxu0 %vm1188_vm0, %v1187_v5  ;;  %1004 = vmatpush3.bf16.msra.mxu0 %v1063_v37 }
 0x118   :  { %1005 = vmatprep.subr.bf16.mxu0 %v1187_v5 }
 0x11b   :  { %1006 = vmatpush3.bf16.msra.mxu0 %v1064_v22 }
 0x11c   :  { %1007 = vmatprep.subr.bf16.mxu0 %v1187_v5 }
 0x11f   :  { %1008 = vmatpush3.bf16.msra.mxu0 %v1065_v27 }
 0x120   :  { %1009 = vmatprep.subr.bf16.mxu0 %v1187_v5 }
 0x123   :  { %1010 = vmatpush3.bf16.msra.mxu0 %v1066_v38 }
 0x124   :  { %1011 = vmatprep.subr.bf16.mxu0 %v1187_v5 }
 0x127   :  { %1012 = vmatpush3.bf16.msra.mxu0 %v1067_v40 }
 0x128   :  { %1013 = vmatprep.subr.bf16.mxu0 %v1187_v5 }
 0x12b   :  { %1014 = vmatpush3.bf16.msra.mxu0 %v1068_v42 }
 0x12c   :  { %1015 = vmatprep.subr.bf16.mxu0 %v1187_v5 }
 0x12f   :  { %1016 = vmatpush3.bf16.msra.mxu0 %v1069_v43 }
 0x130   :  { %1017 = vmatprep.subr.bf16.mxu0 %v1187_v5 }
 0x133   :  { %1018 = vmatpush3.bf16.msra.mxu0 %v1070_v18 }
 0x1e9   :  { %v624_v19 = vpop.f32.mrb[0].mxu0  ;;  %v713_v44 = vpop.f32.mrb[0].mxu1 }
 0x1ea   :  { %v714_v46 = vadd.f32 %v713_v44, %v624_v19  ;;  %v981_v45 = vpop.f32.mrb[1].mxu0  ;;  %v1001_v47 = vpop.f32.mrb[1].mxu1 }
 0x1eb   :  { %v627_v48 = vpop.f32.mrb[2].mxu0  ;;  %v716_v49 = vpop.f32.mrb[2].mxu1 }
 0x1ec   :  { %v727_v50 = vadd.f32 %v917_v39, %v714_v46  ;;  %v717_v52 = vadd.f32 %v716_v49, %v627_v48  ;;  %v982_v53 = vpop.f32.mrb[3].mxu0  ;;  %v1002_v54 = vpop.f32.mrb[3].mxu1 }
 0x1ee   :  { %v729_v51 = vsub.f32 0.0, %v727_v50  ;;  %v728_v55 = vadd.f32 %v917_v39, %v717_v52 }
 0x1f0   :  { %v731_v5 = vmul.f32 1.442695, %v729_v51  ;;  %v730_v56 = vsub.f32 0.0, %v728_v55 }
 0x1f2   :  { %1079 = vpow2.f32 %v731_v5  ;;  %v733_v57 = vmul.f32 1.442695, %v730_v56 }
 0x1f4   :  { %1081 = vpow2.f32 %v733_v57 }
 0x1fc   :  { %v1080_v23 = vpop.eup %1079 }
 0x1fd   :  { %v735_v58 = vadd.f32 1.0, %v1080_v23 }
 0x1fe   :  { %v1082_v59 = vpop.eup %1081 }
 0x1ff   :  { %1083 = vrcp.f32 %v735_v58  ;;  %v736_v61 = vadd.f32 1.0, %v1082_v59 }
 0x201   :  { %1085 = vrcp.f32 %v736_v61 }
 0x209   :  { %v1084_v62 = vpop.eup %1083 }
 0x20a   :  { %v739_v0 = vmul.f32 %v1084_v62, %v727_v50 }
 0x20b   :  { %v1086_v63 = vpop.eup %1085 }
 0x20c   :  { %v740_v1 = vmul.f32 %v1086_v63, %v728_v55 }
 0x20e   :  { %v741_v41 = vpack.c.bf16 %v740_v1, %v739_v0 }
 0x210   :  { %1020 = vmatmul.mubr.bf16.vlgmr.msra.gmra.mrb[4].mxu0 %v741_v41 }
 0x2e3   :  { %v849_v60 = vpop.f32.mrb[4].mxu0 }
 0x2e4   :  { %v1021_v3 = vpop.f32.mrb[5].mxu0  ;;  %v850_v6 = vadd.f32 %v918_v2, %v849_v60 }
 0x2e5   :  { %v852_v4 = vpop.f32.mrb[6].mxu0 }
 0x2e6   :  { %v853_v7 = vadd.f32 %v918_v2, %v852_v4  ;;  %v1022_v8 = vpop.f32.mrb[7].mxu0 }
 0x2e8   :  { %v934_v34 = vpack.c.bf16 %v853_v7, %v850_v6 }
 0x2ea   :  { %935 = vst [vmem:[#allocation9] sm:$0xff] %v934_v34  }
 0x2eb   :  { %1164 = shalt.err (!%p1161_p0)
}
 0x2ec   :  { %s1165_s25 = scalar_lea.hbm %s1432_s7, 128 }
 0x2ed   :  { %p1166_p1 = scmp.ne.s32.totalorder %s1432_s7, %s1165_s25  ;;  %p1169_p2 = scmp.lt.u32.totalorder %s1165_s25, %s1432_s7 }
 0x2ef   :  { %p1171_p3 = pnand %p1169_p2, %p1166_p1 }
 0x2f1   :  { %1174 = shalt.err (!%p1171_p3)
}
 0x2f2   :  { %877 = dma.vmem_to_hbm [thread:$0]  %s872_s23, 128, %s1432_s7, [#allocation5], %s1183_s13, %s1183_s13, %s1184_s14  }
 0x2f3   :  { %1179 = dma.done.wait [#allocation5], 128  }
 0x2f4   :  { %1180 = vsyncadd [#allocation5], 4294967168 }
 0x2f5   :  { %881 = vsyncpa [#allocation4], 1 }
 0x2f6   :  { %882 = vsyncpa [#allocation7], 1 }
 0x2f7   :  { %883 = vsyncpa [#allocation5], 1 }

</bundles_post_ra>
